<compile_context>
chip_gen: v7x
topology: tpu7x:2x2x1
jax: 0.10.0
libtpu: 0.0.40
codegen_flags: <defaults>
</compile_context>

<pallas_src>
import functools

import jax
import jax.numpy as jnp
from jax.experimental import pallas as pl
from jax.experimental.pallas import tpu as pltpu

_LANE_MIN = 128
_SMALL_N_BYPASS = 64 * 1024      # below this, launch overhead dwarfs the ~few-hundred-KB traffic
_MIN_SPLIT_BYTES = 256 * 1024    # above this, force >=2 grid steps (v7x two-TC sharding)
_ROW_ALIGN = 32                  # tile_rows multiple -> valid sublane tiling down to int8 packing


def _shifted_sinh_kernel(x_ref, o_ref, *, shift):
    x = x_ref[...].astype(jnp.float32)

    # One EUP transcendental per element; exp(-x) = 1/exp(x).  Exact divide keeps +/-inf
    # semantics when exp under/overflows (approx vrcp would NaN there).
    ex = jnp.exp(x)
    enx = 1.0 / ex
    sinh_big = 0.5 * (ex - enx)

    # Small-|x| Taylor branch: sinh(x) = x + x^3/6 + x^5/120 + O(x^7); avoids the
    # exp(x)-exp(-x) cancellation near 0.  Compare x^2 < 0.25^2 (drops the abs op).
    x2 = x * x
    sinh_small = x * (1.0 + x2 * (1.0 / 6.0 + x2 * (1.0 / 120.0)))

    sinh = jnp.where(x2 < 0.0625, sinh_small, sinh_big)
    o_ref[...] = (sinh + jnp.float32(shift)).astype(o_ref.dtype)


def _vmem_capacity_bytes() -> int:
    """Physical VMEM per TensorCore; conservative (v7x) fallback if the query fails."""
    try:
        info = pltpu.get_tpu_info()
        cap = int(getattr(info, "vmem_capacity_bytes", 0))
        if cap > 0:
            return cap
    except Exception:
        pass
    return 64 * 1024 * 1024


def _pallas_flat(x_flat: jax.Array, shift: float, out_dtype, donate_input: bool) -> jax.Array:
    """Run the kernel on a flat, 128-aligned array. Returns a flat array of out_dtype."""
    n = x_flat.size  # guaranteed multiple of 128 by the caller

    # Lane-dense 2D layout without copying: widest lane dim that divides n, preferring a
    # row count that is a multiple of 8 (clean sublane tiling).
    lane = _LANE_MIN
    for cand in (1024, 512, 256, 128):
        if n % cand == 0 and (n // cand) % 8 == 0:
            lane = cand
            break
    else:
        for cand in (1024, 512, 256, 128):
            if n % cand == 0:
                lane = cand
                break

    rows = n // lane
    x2d = x_flat.reshape(rows, lane)
    itemsize = x2d.dtype.itemsize
    total_bytes = n * itemsize

    # Block sizing: ~8 MiB per block (dtype-aware via itemsize), capped so the 4 live
    # double-buffered in+out blocks stay within half of this generation's VMEM.
    vmem_cap = _vmem_capacity_bytes()
    target_block_bytes = min(8 * 1024 * 1024, vmem_cap // 8)
    target_rows = max(_ROW_ALIGN,
                      (target_block_bytes // (lane * itemsize)) // _ROW_ALIGN * _ROW_ALIGN)

    if rows <= _ROW_ALIGN or total_bytes <= _MIN_SPLIT_BYTES:
        # Tiny-ish: one block (block dim == full array dim is always a legal block shape).
        tile_rows = rows
        grid_steps = 1
    else:
        # Guarantee >= 2 (and preferably an even number of) blocks so both v7x TensorCores
        # get balanced work; cap tile size at target_rows for big arrays.
        desired = max(2, pl.cdiv(rows, target_rows))
        if desired % 2:
            desired += 1
        tile_rows = min(target_rows, pl.cdiv(pl.cdiv(rows, desired), _ROW_ALIGN) * _ROW_ALIGN)
        tile_rows = max(_ROW_ALIGN, min(tile_rows, rows))
        grid_steps = pl.cdiv(rows, tile_rows)  # overhang block is masked by Pallas

    tile_bytes = tile_rows * lane * itemsize
    vmem_limit = max(16 * 1024 * 1024, min(vmem_cap, 4 * tile_bytes + 8 * 1024 * 1024))

    kernel = functools.partial(_shifted_sinh_kernel, shift=float(shift))
    out2d = pl.pallas_call(
        kernel,
        out_shape=jax.ShapeDtypeStruct((rows, lane), out_dtype),
        grid=(grid_steps,),
        in_specs=[pl.BlockSpec((tile_rows, lane), lambda i: (i, 0))],
        out_specs=pl.BlockSpec((tile_rows, lane), lambda i: (i, 0)),
        # Safe: in/out index maps are identical per block (pure elementwise streaming).
        input_output_aliases=({0: 0} if donate_input else {}),
        compiler_params=pltpu.CompilerParams(
            dimension_semantics=("parallel",),   # shards the grid across v7x's 2 TCs
            vmem_limit_bytes=int(vmem_limit),
        ),
    )(x2d)
    return out2d.reshape(-1)


def shifted_sinh_y_fixed(x: jax.Array, shift: float = 1.0, *, donate_input: bool = False) -> jax.Array:
    """Elementwise sinh(x) + shift. Any shape; float dtypes preserved."""
    orig_shape = x.shape
    orig_dtype = x.dtype
    n = x.size
    if n == 0:
        return x

    if n < _SMALL_N_BYPASS:
        # Tiny tensors: fixed pallas_call overhead dwarfs the HBM traffic; fused XLA wins.
        return jnp.sinh(x) + shift

    x_flat = jnp.ravel(x)  # metadata-only for contiguous arrays
    rem = n % _LANE_MIN
    if rem == 0:
        out_flat = _pallas_flat(x_flat, shift, orig_dtype, donate_input)
    else:
        # Zero-copy kernel on the 128-aligned prefix; the <128-element tail goes through jnp.
        # TODO(synk): a fully copy-free unaligned path would mask the tail in-kernel via a
        # scalar-prefetched length; the prefix/tail stitch still costs one output concat pass.
        n_main = n - rem
        main = _pallas_flat(x_flat[:n_main], shift, orig_dtype, False)
        tail = (jnp.sinh(x_flat[n_main:].astype(jnp.float32)) + jnp.float32(shift)).astype(orig_dtype)
        out_flat = jnp.concatenate([main, tail])

    return out_flat.reshape(orig_shape)


if __name__ == "__main__":
    shift = 1.0  # module default
    key = jax.random.PRNGKey(0)
    k1, k2, k3, k4, k5 = jax.random.split(key, 5)

    # 1) Module-typical small NCHW feature map (small-n bypass path).
    x_small = jax.random.normal(k1, (2, 4, 16, 16), dtype=jnp.float32)
    y_small = jax.block_until_ready(shifted_sinh_y_fixed(x_small, shift=shift))
    assert y_small.shape == x_small.shape and y_small.dtype == x_small.dtype
    assert jnp.allclose(y_small, jnp.sinh(x_small) + shift, atol=1e-5, rtol=1e-5), "mismatch (bypass path)"

    # 2) Aligned Pallas path with >= 2 grid steps (exercises the 2-TC parallel split).
    x_med = jax.random.normal(k2, (2, 4, 128, 128), dtype=jnp.float32) * 3.0
    y_med = jax.block_until_ready(shifted_sinh_y_fixed(x_med, shift=shift))
    assert jnp.allclose(y_med, jnp.sinh(x_med) + shift, atol=1e-4, rtol=1e-5), "mismatch (aligned path)"

    # 3) Multi-block f32 path.
    x_big = jax.random.normal(k3, (8, 16, 64, 128), dtype=jnp.float32)
    y_big = jax.block_until_ready(shifted_sinh_y_fixed(x_big, shift=shift))
    assert jnp.allclose(y_big, jnp.sinh(x_big) + shift, atol=1e-5, rtol=1e-5), "mismatch (multi-block path)"

    # 4) bf16 path (narrow-dtype block sizing).
    x_bf = jax.random.normal(k4, (4, 8, 128, 128), dtype=jnp.bfloat16)
    y_bf = jax.block_until_ready(shifted_sinh_y_fixed(x_bf, shift=shift))
    ref_bf = jnp.sinh(x_bf.astype(jnp.float32)) + shift
    assert y_bf.dtype == jnp.bfloat16
    assert jnp.allclose(y_bf.astype(jnp.float32), ref_bf, atol=2e-2, rtol=2e-2), "mismatch (bf16 path)"

    # 5) Unaligned total size (prefix kernel + jnp tail stitch).
    x_odd = jax.random.normal(k5, (67, 33, 31), dtype=jnp.float32)  # 68541 elems, 68541 % 128 = 61
    y_odd = jax.block_until_ready(shifted_sinh_y_fixed(x_odd, shift=shift))
    assert jnp.allclose(y_odd, jnp.sinh(x_odd) + shift, atol=1e-5, rtol=1e-5), "mismatch (unaligned path)"

    print("KERNEL_OK")
</pallas_src>

<mosaic_0001>
module attributes {stable_mosaic.version = 11 : i64} {
  func.func @_shifted_sinh_kernel(%arg0: i32, %arg1: memref<64x1024xf32, #tpu.memory_space<vmem>>, %arg2: memref<64x1024xf32, #tpu.memory_space<vmem>>) attributes {dimension_semantics = [#tpu.dimension_semantics<parallel>], iteration_bounds = array<i64: 2>, scalar_prefetch = 0 : i64, scratch_operands = 0 : i64, tpu.core_type = #tpu.core_type<tc>, window_params = [{transform_indices = @transform_0, window_bounds = array<i64: 64, 1024>}, {transform_indices = @transform_1, window_bounds = array<i64: 64, 1024>}]} {
    %c0 = arith.constant 0 : index
    %c0_0 = arith.constant 0 : index
    %0 = vector.load %arg1[%c0, %c0_0] : memref<64x1024xf32, #tpu.memory_space<vmem>>, vector<64x1024xf32>
    %1 = math.exp %0 : vector<64x1024xf32>
    %cst = arith.constant 1.000000e+00 : f32
    %2 = vector.broadcast %cst : f32 to vector<64x1024xf32>
    %3 = arith.divf %2, %1 : vector<64x1024xf32>
    %4 = arith.subf %1, %3 : vector<64x1024xf32>
    %cst_1 = arith.constant 5.000000e-01 : f32
    %5 = vector.broadcast %cst_1 : f32 to vector<64x1024xf32>
    %6 = arith.mulf %5, %4 : vector<64x1024xf32>
    %7 = arith.mulf %0, %0 : vector<64x1024xf32>
    %cst_2 = arith.constant 0.00833333377 : f32
    %8 = vector.broadcast %cst_2 : f32 to vector<64x1024xf32>
    %9 = arith.mulf %7, %8 : vector<64x1024xf32>
    %cst_3 = arith.constant 0.166666672 : f32
    %10 = vector.broadcast %cst_3 : f32 to vector<64x1024xf32>
    %11 = arith.addf %10, %9 : vector<64x1024xf32>
    %12 = arith.mulf %7, %11 : vector<64x1024xf32>
    %cst_4 = arith.constant 1.000000e+00 : f32
    %13 = vector.broadcast %cst_4 : f32 to vector<64x1024xf32>
    %14 = arith.addf %13, %12 : vector<64x1024xf32>
    %15 = arith.mulf %0, %14 : vector<64x1024xf32>
    %cst_5 = arith.constant 6.250000e-02 : f32
    %16 = vector.broadcast %cst_5 : f32 to vector<64x1024xf32>
    %17 = arith.cmpf olt, %7, %16 : vector<64x1024xf32>
    %18 = arith.select %17, %15, %6 : vector<64x1024xi1>, vector<64x1024xf32>
    %cst_6 = arith.constant 1.000000e+00 : f32
    %19 = vector.broadcast %cst_6 : f32 to vector<64x1024xf32>
    %20 = arith.addf %18, %19 : vector<64x1024xf32>
    %c0_7 = arith.constant 0 : index
    %c0_8 = arith.constant 0 : index
    %21 = vector.load %arg2[%c0_7, %c0_8] : memref<64x1024xf32, #tpu.memory_space<vmem>>, vector<64x1024xf32>
    tpu.vector_store %arg2[%c0_7, %c0_8], %20 {strides = array<i32>} : memref<64x1024xf32, #tpu.memory_space<vmem>>, vector<64x1024xf32>,
    return
  }
  func.func @transform_0(%arg0: i32) -> (i32, i32) {
    %c0_i32 = arith.constant 0 : i32
    %c0_i32_0 = arith.constant 0 : i32
    return %arg0, %c0_i32 : i32, i32
  }
  func.func @transform_1(%arg0: i32) -> (i32, i32) {
    %c0_i32 = arith.constant 0 : i32
    %c0_i32_0 = arith.constant 0 : i32
    return %arg0, %c0_i32 : i32, i32
  }
}

</mosaic_0001>

<bundles_post_ra>
// kernel: tpu_custom_call.1
= control target key start
LH: loop header
LB: loop body
LE: loop exit
PB: predicated region body
PF: predicated region fallthrough
CT: control target
= control target key end

     0   :  { %6 = vsyncpa [#allocation3], 0  ;;  %s3108_s0 = inlined_call_operand.hbm [shape: f32[128,1024], index: 0, kind: input, shape index: {}]   ;;  %s3109_s1 = inlined_call_operand.hbm [shape: f32[128,1024], index: 1, kind: output, shape index: {}]  }
   0x1   :  { %8 = vsyncpa [#allocation3 + $0x1], 0 }
   0x2   :  { %9 = vsyncpa [#allocation4], 0 }
   0x3   :  { %11 = vsyncpa [#allocation4 + $0x1], 0  ;;  %s1754_s6 = smov 0   ;;  %s1756_s7 = smov 0  }
   0x4   :  { %s1758_s8 = smov 0   ;;  %s1760_s9 = smov 0  }
   0x5 LB: > { %s1775_s10 = sadd.s32 4294967295, %s1736_s9   ;;  %s1314_s11 = sadd.s32 4294967294, %s1736_s9   ;;  %s1736_s9 = sphi %s1760_s9, %s3122_s9   ;;  %s1732_s8 = sphi %s1758_s8, %s3121_s8   ;;  %s1728_s7 = sphi %s1756_s7, %s3120_s7   ;;  %s1724_s6 = sphi %s1754_s6, %s3119_s6  }
   0x6   : > { %s1779_s12 = sadd.s32 1, %s1736_s9   ;;  %s24_s13 = sadd.s32 1, %s1732_s8 }
   0x7   : > { %s21_s14 = ssub.s32 %s1736_s9, %s1779_s12  ;;  %p31_p0 = scmp.ne.s32.totalorder %s1732_s8, %s1728_s7 }
   0x8   : > { %p22_p1 = scmp.eq.s32.totalorder %s21_s14, 0  ;;  %p32_p2 = scmp.eq.s32.totalorder %s1736_s9, 0 }
   0x9   : > { %p37_p3 = scmp.ne.s32.totalorder %s1728_s7, %s1724_s6  ;;  %p38_p4 = scmp.eq.s32.totalorder %s1775_s10, 0 }
   0xa   : > { %s1791_s15 = scalar_select %p22_p1, %s1732_s8, %s24_s13  }
   0xb   : > { %p1793_p5 = por %p32_p2, %p31_p0  ;;  %p1797_p6 = por %p38_p4, %p37_p3 }
   0xc   : > { %p61_p7 = scmp.eq.s32.totalorder %s1775_s10, 1  ;;  %p67_p8 = scmp.eq.s32.totalorder %s1314_s11, 1 }
   0xd   : > { %p1346_p10 = scmp.lt.s32.totalorder %s1736_s9, 2  ;;  %s87_s20 = sand.u32 1, %s1732_s8  }
   0xe   : > { %p1804_p11 = por %p61_p7, %p31_p0  ;;  %p1808_p12 = por %p67_p8, %p37_p3 }
   0xf   : > { %s1331_s21 = sshll.u32 %s1736_s9, 13  ;;  %s1317_s22 = sshll.u32 %s87_s20, 9 }
  0x10   : > { %s3113_s18 = scalar_select %p1804_p11, 1, 0 }
  0x11   : > { %s3114_s19 = scalar_select %p1808_p12, 1, 0 }
  0x12   : > { %s1817_s25 = scalar_lea.hbm %s3108_s0, %s1331_s21  ;;  %s91_s26 = scalar_lea.vmem [#allocation2], %s1317_s22 }
  0x13   : > { %s99_s27 = sshll.u32 %s91_s26, 4  ;;  %p1821_p13 = pnand %p1346_p10, %p1793_p5  ;;  %s1825_s27 = int_to_ptr.vmem [resolvable:$true] %s99_s27 }
  0x14   : > { %s1827_s29 = scalar_lea.sflag [#allocation3], %s87_s20  ;;  %s1640_s30 = scalar_lea.hbm %s1817_s25, 8192 }
  0x15   : > { %p1641_p0 = scmp.ne.s32.totalorder %s1817_s25, %s1640_s30  ;;  %p1642_p1 = pneg %p1821_p13 }
  0x16   : > { %s1645_s4 = scalar_lea.hbm %s3108_s0, 16384  ;;  %p1646_p4 = scmp.lt.u32.totalorder %s1817_s25, %s3108_s0 }
  0x17   : > { %p1643_p2 = pnand %p1642_p1, %p1641_p0  ;;  %p1647_p5 = scmp.lt.u32.totalorder %s1645_s4, %s1640_s30 }
  0x18   : > { %p1649_p8 = scmp.lt.u32.totalorder %s1640_s30, %s1817_s25 }
  0x19   : > { %p1644_p3 = pneg %p1643_p2  ;;  %p1648_p7 = por %p1647_p5, %p1646_p4 }
  0x1b   : > { %p1650_p10 = por %p1649_p8, %p1648_p7 }
  0x1d   : > { %p1651_p9 = pnand %p1650_p10, %p1644_p3 }
  0x1f   : > { %1654 = shalt.err (!%p1651_p9)
}
  0x20   : > { %s1655_s13 = scalar_lea.vmem %s1825_s27, 8192  ;;  %s1738_s14 = smov [#allocation2]  }
  0x21   : > { %p1656_p0 = scmp.ne.s32.totalorder %s1825_s27, %s1655_s13  ;;  %s1660_s16 = sshll.u32 %s1738_s14, 4  ;;  %s1661_s16 = int_to_ptr.vmem [resolvable:$false] %s1660_s16 }
  0x22   : > { %s1662_s20 = scalar_lea.vmem %s1661_s16, 16384  ;;  %p1663_p11 = scmp.lt.s32.totalorder %s1825_s27, %s1661_s16 }
  0x23   : > { %p1658_p2 = pnand %p1656_p0, %p1642_p1  ;;  %p1664_p4 = scmp.lt.s32.totalorder %s1662_s20, %s1655_s13 }
  0x25   : > { %p1659_p12 = pneg %p1658_p2  ;;  %p1665_p5 = por %p1664_p4, %p1663_p11 }
  0x27   : > { %p1666_p7 = pnand %p1665_p5, %p1659_p12 }
  0x29   : > { %1669 = shalt.err (!%p1666_p7)
}
  0x2a   : > { %s1739_s21 = smov 1024   ;;  %s1740_s22 = smov 64  }
  0x2b   : > { %1341 = dma.hbm_to_vmem [thread:$0]  (!%p1821_p13), %s1817_s25, 8192, %s1825_s27, %s1827_s29, %s1739_s21, %s1739_s21, %s1740_s22  }
  0x2c   : > { %p1321_p9 = scmp.ge.s32.totalorder %s1736_s9, 1  ;;  %p107_p1 = scmp.lt.s32.totalorder %s1736_s9, 3 }
  0x2e   : > { %p108_p3 = pnand %p1321_p9, %p107_p1 }
  0x2f   : > { %s1858_s23 = sand.u32 (!%p108_p3), 1, %s1728_s7  }
  0x30   : > { %111 = sbr.rel (%p108_p3) target bundleno = 307 (0x133), region = 24  ;;  %s1322_s24 = sshll.u32 (!%p108_p3), %s1858_s23, 9 }
  0x31   : > { %s114_s26 = scalar_lea.sflag (!%p108_p3), [#allocation3], %s1858_s23  ;;  %s1864_s30 = scalar_lea.vmem (!%p108_p3), [#allocation2], %s1322_s24 }
  0x37   : > { %1715 = dma.done.wait (%p1797_p6), %s114_s26, 8192  }
  0x38   : > { %1717 = vsyncadd (%p1797_p6), %s114_s26, 4294959104  ;;  %v1871_v0 = vld [vmem:[%s1864_s30] sm:$0xff]  ;;  %v1874_v1 = vld [vmem:[%s1864_s30 + $0x8] sm:$0xff]  ;;  %s2043_s17 = scalar_lea.vmem [#allocation5], %s1322_s24  ;;  %s1333_s25 = sshll.u32 %s1775_s10, 13 }
  0x39   : > { %v1877_v2 = vld [vmem:[%s1864_s30 + $0x10] sm:$0xff]  ;;  %v202_v3 = vmul.f32 1.442695, %v1871_v0  ;;  %v1882_v4 = vmul.f32 %v1871_v0, %v1871_v0  ;;  %v204_v5 = vmul.f32 1.442695, %v1874_v1  ;;  %v1886_v6 = vld [vmem:[%s1864_s30 + $0x18] sm:$0xff]  ;;  %v1893_v10 = vmul.f32 %v1874_v1, %v1874_v1  ;;  %s3061_s2 = scalar_lea.hbm %s3109_s1, %s1333_s25 }
  0x3a   : > { %v206_v7 = vmul.f32 1.442695, %v1877_v2  ;;  %v208_v8 = vmul.f32 1.442695, %v1886_v6  ;;  %v1897_v11 = vmul.f32 %v1877_v2, %v1877_v2  ;;  %v1900_v12 = vld [vmem:[%s1864_s30 + $0x20] sm:$0xff]  ;;  %v1904_v13 = vmul.f32 %v1886_v6, %v1886_v6  ;;  %v1907_v14 = vld [vmem:[%s1864_s30 + $0x28] sm:$0xff] }
  0x3b   : > { %1384 = vpow2.f32 %v202_v3  ;;  %v650_v9 = vmul.f32 0.008333334, %v1882_v4  ;;  %v210_v15 = vmul.f32 1.442695, %v1900_v12  ;;  %v651_v17 = vmul.f32 0.008333334, %v1893_v10 }
  0x3c   : > { %1386 = vpow2.f32 %v204_v5  ;;  %v652_v18 = vmul.f32 0.008333334, %v1897_v11  ;;  %v1914_v19 = vmul.f32 %v1900_v12, %v1900_v12  ;;  %v653_v20 = vmul.f32 0.008333334, %v1904_v13  ;;  %v1925_v27 = vld [vmem:[%s1864_s30 + $0x30] sm:$0xff]  ;;  %v1935_v34 = vld [vmem:[%s1864_s30 + $0x38] sm:$0xff] }
  0x3d   : > { %1388 = vpow2.f32 %v206_v7  ;;  %v714_v16 = vadd.f32 0.16666667, %v650_v9  ;;  %v212_v21 = vmul.f32 1.442695, %v1907_v14  ;;  %v1920_v22 = vmul.f32 %v1907_v14, %v1907_v14  ;;  %v1952_v42 = vld [vmem:[%s1864_s30 + $0x40] sm:$0xff]  ;;  %v1960_v47 = vld [vmem:[%s1864_s30 + $0x48] sm:$0xff] }
  0x3e   : > { %1390 = vpow2.f32 %v208_v8  ;;  %v654_v23 = vmul.f32 0.008333334, %v1914_v19  ;;  %v715_v25 = vadd.f32 0.16666667, %v651_v17  ;;  %v716_v26 = vadd.f32 0.16666667, %v652_v18 }
  0x3f   : > { %1392 = vpow2.f32 %v210_v15  ;;  %v655_v24 = vmul.f32 0.008333334, %v1920_v22  ;;  %v778_v28 = vmul.f32 %v714_v16, %v1882_v4  ;;  %v717_v29 = vadd.f32 0.16666667, %v653_v20  ;;  %v1970_v51 = vld [vmem:[%s1864_s30 + $0x50] sm:$0xff]  ;;  %v1997_v15 = vld [vmem:[%s1864_s30 + $0x58] sm:$0xff] }
  0x40   : > { %1394 = vpow2.f32 %v212_v21  ;;  %v718_v31 = vadd.f32 0.16666667, %v654_v23  ;;  %v1932_v33 = vmul.f32 %v1925_v27, %v1925_v27  ;;  %v214_v36 = vmul.f32 1.442695, %v1925_v27  ;;  %s1241_s27 = sshll.u32 %s2043_s17, 4  ;;  %s1227_s3 = scalar_lea.sflag [#allocation4], %s1858_s23  ;;  %s3063_s27 = int_to_ptr.vmem [resolvable:$true] %s1241_s27 }
  0x41   : > { %v719_v32 = vadd.f32 0.16666667, %v655_v24  ;;  %v1943_v37 = vmul.f32 %v1935_v34, %v1935_v34  ;;  %v779_v39 = vmul.f32 %v715_v25, %v1893_v10  ;;  %v780_v40 = vmul.f32 %v716_v26, %v1897_v11  ;;  %s1670_s10 = scalar_lea.vmem %s3063_s27, 8192  ;;  %p3116_p11 = scmp.ne.s32.totalorder %s3113_s18, 0 }
  0x42   : > { %v656_v41 = vmul.f32 0.008333334, %v1932_v33  ;;  %v842_v44 = vadd.f32 1.0, %v778_v28  ;;  %v781_v45 = vmul.f32 %v717_v29, %v1904_v13  ;;  %v216_v46 = vmul.f32 1.442695, %v1935_v34  ;;  %p1671_p6 = scmp.ne.s32.totalorder %s3063_s27, %s1670_s10  ;;  %s1741_s4 = smov [#allocation5]  }
  0x43   : > { %v782_v48 = vmul.f32 %v718_v31, %v1914_v19  ;;  %v783_v49 = vmul.f32 %v719_v32, %v1920_v22  ;;  %v1967_v50 = vmul.f32 %v1952_v42, %v1952_v42  ;;  %vm970_vm0 = vcmp.lt.f32.partialorder %v1882_v4, 0.0625  ;;  %s1674_s5 = sshll.u32 %s1741_s4, 4  ;;  %s1675_s5 = int_to_ptr.vmem [resolvable:$false] %s1674_s5 }
  0x44   : > { %v720_v53 = vadd.f32 0.16666667, %v656_v41  ;;  %v657_v54 = vmul.f32 0.008333334, %v1943_v37  ;;  %v218_v55 = vmul.f32 1.442695, %v1952_v42  ;;  %v1986_v61 = vmul.f32 %v1960_v47, %v1960_v47  ;;  %p1672_p12 = pnand %p1671_p6, %p3116_p11  ;;  %p1677_p8 = scmp.lt.s32.totalorder %s3063_s27, %s1675_s5 }
  0x45   : > { %v1928_v30 = vpop.eup %1384  ;;  %v843_v56 = vadd.f32 1.0, %v779_v39  ;;  %vm971_vm1 = vcmp.lt.f32.partialorder %v1893_v10, 0.0625  ;;  %v658_v57 = vmul.f32 0.008333334, %v1967_v50  ;;  %v220_v58 = vmul.f32 1.442695, %v1960_v47 }
  0x46   : > { %v1937_v35 = vpop.eup %1386  ;;  %1396 = vrcp.f32 %v1928_v30  ;;  %v844_v60 = vadd.f32 1.0, %v780_v40  ;;  %vm972_vm2 = vcmp.lt.f32.partialorder %v1897_v11, 0.0625  ;;  %v222_v62 = vmul.f32 1.442695, %v1970_v51  ;;  %p1673_p13 = pneg %p1672_p12  ;;  %s1676_s11 = scalar_lea.vmem %s1675_s5, 16384 }
  0x47   : > { %v1945_v38 = vpop.eup %1388  ;;  %1398 = vrcp.f32 %v1937_v35  ;;  %v845_v63 = vadd.f32 1.0, %v781_v45  ;;  %vm973_vm3 = vcmp.lt.f32.partialorder %v1904_v13, 0.0625  ;;  %v846_v3 = vadd.f32 1.0, %v782_v48  ;;  %p1678_p10 = scmp.lt.s32.totalorder %s1676_s11, %s1670_s10 }
  0x48   : > { %v1954_v43 = vpop.eup %1390  ;;  %1400 = vrcp.f32 %v1945_v38  ;;  %v1993_v5 = vmul.f32 %v1970_v51, %v1970_v51  ;;  %v847_v7 = vadd.f32 1.0, %v783_v49  ;;  %v784_v8 = vmul.f32 %v720_v53, %v1932_v33 }
  0x49   : > { %1402 = vrcp.f32 %v1954_v43  ;;  %v1972_v52 = vpop.eup %1392  ;;  %v721_v9 = vadd.f32 0.16666667, %v657_v54  ;;  %v906_v16 = vmul.f32 %v842_v44, %v1871_v0  ;;  %vm974_vm4 = vcmp.lt.f32.partialorder %v1914_v19, 0.0625  ;;  %v2074_v19 = vld [vmem:[%s1864_s30 + $0x70] sm:$0xff]  ;;  %p1679_p0 = por %p1678_p10, %p1677_p8 }
  0x4a   : > { %1404 = vpow2.f32 %v214_v36  ;;  %v1981_v59 = vpop.eup %1394  ;;  %v722_v17 = vadd.f32 0.16666667, %v658_v57  ;;  %v659_v18 = vmul.f32 0.008333334, %v1986_v61  ;;  %v907_v21 = vmul.f32 %v843_v56, %v1874_v1 }
  0x4b   : > { %1406 = vrcp.f32 %v1972_v52  ;;  %v908_v23 = vmul.f32 %v844_v60, %v1877_v2  ;;  %v660_v24 = vmul.f32 0.008333334, %v1993_v5  ;;  %v909_v28 = vmul.f32 %v845_v63, %v1886_v6  ;;  %p1680_p2 = pnand %p1679_p0, %p1673_p13 }
  0x4c   : > { %1408 = vpow2.f32 %v216_v46  ;;  %v910_v0 = vmul.f32 %v846_v3, %v1900_v12  ;;  %vm975_vm5 = vcmp.lt.f32.partialorder %v1920_v22, 0.0625  ;;  %v224_v29 = vmul.f32 1.442695, %v1997_v15 }
  0x4d   : > { %1410 = vrcp.f32 %v1981_v59  ;;  %v911_v2 = vmul.f32 %v847_v7, %v1907_v14  ;;  %v2012_v32 = vadd.f32 1.0, %v784_v8  ;;  %v785_v36 = vmul.f32 %v721_v9, %v1943_v37 }
  0x4e   : > { %1412 = vpow2.f32 %v218_v55  ;;  %v786_v12 = vmul.f32 %v722_v17, %v1967_v50  ;;  %v723_v40 = vadd.f32 0.16666667, %v659_v18  ;;  %v724_v46 = vadd.f32 0.16666667, %v660_v24 }
  0x4f   : > { %1414 = vpow2.f32 %v220_v58  ;;  %vm976_vm6 = vcmp.lt.f32.partialorder %v1932_v33, 0.0625  ;;  %vm977_vm7 = vcmp.lt.f32.partialorder %v1943_v37, 0.0625  ;;  %vm978_vm8 = vcmp.lt.f32.partialorder %v1967_v50, 0.0625 }
  0x50   : > { %v1397_v20 = vpop.eup %1396  ;;  %1416 = vpow2.f32 %v222_v62  ;;  %v787_v8 = vmul.f32 %v723_v40, %v1986_v61  ;;  %v788_v18 = vmul.f32 %v724_v46, %v1993_v5  ;;  %v912_v22 = vmul.f32 %v2012_v32, %v1925_v27 }
  0x51   : > { %v1399_v25 = vpop.eup %1398  ;;  %v458_v26 = vsub.f32 %v1928_v30, %v1397_v20  ;;  %1418 = vpow2.f32 %v224_v29  ;;  %vm979_vm9 = vcmp.lt.f32.partialorder %v1986_v61, 0.0625  ;;  %vm980_vm10 = vcmp.lt.f32.partialorder %v1993_v5, 0.0625 }
  0x52   : > { %v1401_v31 = vpop.eup %1400  ;;  %v459_v1 = vsub.f32 %v1937_v35, %v1399_v25  ;;  %v2021_v35 = vld [vmem:[%s1864_s30 + $0x60] sm:$0xff]  ;;  %v849_v25 = vadd.f32 1.0, %v785_v36  ;;  %v230_v36 = vmul.f32 1.442695, %v2074_v19 }
  0x53   : > { %v1403_v39 = vpop.eup %1402  ;;  %v522_v30 = vmul.f32 0.5, %v458_v26  ;;  %v460_v6 = vsub.f32 %v1945_v38, %v1401_v31  ;;  %v2028_v38 = vmul.f32 %v1997_v15, %v1997_v15  ;;  %v226_v60 = vmul.f32 1.442695, %v2021_v35  ;;  %v2086_v31 = vld [vmem:[%s1864_s30 + $0x78] sm:$0xff] }
  0x54   : > { %v2017_v41 = vpop.eup %1404  ;;  %v523_v44 = vmul.f32 0.5, %v459_v1  ;;  %v461_v45 = vsub.f32 %v1954_v43, %v1403_v39  ;;  %v232_v27 = vmul.f32 1.442695, %v2086_v31 }
  0x55   : > { %v1407_v14 = vpop.eup %1406  ;;  %v1034_v48 = vsel %vm970_vm0, %v906_v16, %v522_v30  ;;  %v524_v49 = vmul.f32 0.5, %v460_v6  ;;  %1420 = vrcp.f32 %v2017_v41  ;;  %v661_v9 = vmul.f32 0.008333334, %v2028_v38  ;;  %v2057_v16 = vld [vmem:[%s1864_s30 + $0x68] sm:$0xff] }
  0x56   : > { %v2030_v53 = vpop.eup %1408  ;;  %v1098_v54 = vadd.f32 1.0, %v1034_v48  ;;  %v1035_v43 = vsel %vm971_vm1, %v907_v21, %v523_v44  ;;  %v525_v55 = vmul.f32 0.5, %v461_v45  ;;  %v462_v56 = vsub.f32 %v1972_v52, %v1407_v14 }
  0x57   : > { %v1411_v57 = vpop.eup %1410  ;;  %v1099_v4 = vadd.f32 1.0, %v1035_v43  ;;  %v1036_v58 = vsel %vm972_vm2, %v908_v23, %v524_v49  ;;  %1422 = vrcp.f32 %v2030_v53  ;;  %v725_v21 = vadd.f32 0.16666667, %v661_v9 }
  0x58   : > { %v2039_v62 = vpop.eup %1412  ;;  %1162 = vst [vmem:[%s2043_s17] sm:$0xff] %v1098_v54  ;;  %v1100_v10 = vadd.f32 1.0, %v1036_v58  ;;  %v1037_v52 = vsel %vm973_vm3, %v909_v28, %v525_v55  ;;  %v526_v11 = vmul.f32 0.5, %v462_v56  ;;  %v463_v63 = vsub.f32 %v1981_v59, %v1411_v57 }
  0x59   : > { %v2049_v3 = vpop.eup %1414  ;;  %1163 = vst [vmem:[%s2043_s17 + $0x8] sm:$0xff] %v1099_v4  ;;  %v1101_v7 = vadd.f32 1.0, %v1037_v52  ;;  %1424 = vrcp.f32 %v2039_v62  ;;  %v2071_v23 = vmul.f32 %v2021_v35, %v2021_v35  ;;  %v228_v26 = vmul.f32 1.442695, %v2057_v16  ;;  %v2122_v52 = vld [vmem:[%s1864_s30 + $0x80] sm:$0xff] }
  0x5a   : > { %v2059_v13 = vpop.eup %1416  ;;  %1164 = vst [vmem:[%s2043_s17 + $0x10] sm:$0xff] %v1100_v10  ;;  %v1038_v59 = vsel %vm974_vm4, %v910_v0, %v526_v11  ;;  %v527_v17 = vmul.f32 0.5, %v463_v63  ;;  %1426 = vrcp.f32 %v2049_v3  ;;  %v850_v0 = vadd.f32 1.0, %v786_v12 }
  0x5b   : > { %1165 = vst [vmem:[%s2043_s17 + $0x18] sm:$0xff] %v1101_v7  ;;  %v1102_v20 = vadd.f32 1.0, %v1038_v59  ;;  %1428 = vrcp.f32 %v2059_v13  ;;  %v2083_v29 = vmul.f32 %v2057_v16, %v2057_v16  ;;  %v2088_v1 = vpop.eup %1418  ;;  %v851_v30 = vadd.f32 1.0, %v787_v8 }
  0x5c   : > { %v1039_v24 = vsel %vm975_vm5, %v911_v2, %v527_v17  ;;  %1430 = vpow2.f32 %v226_v60  ;;  %v789_v2 = vmul.f32 %v725_v21, %v2028_v38  ;;  %v852_v6 = vadd.f32 1.0, %v788_v18 }
  0x5d   : > { %1166 = vst [vmem:[%s2043_s17 + $0x20] sm:$0xff] %v1102_v20  ;;  %v1103_v28 = vadd.f32 1.0, %v1039_v24  ;;  %1432 = vpow2.f32 %v228_v26  ;;  %v662_v12 = vmul.f32 0.008333334, %v2071_v23  ;;  %v913_v44 = vmul.f32 %v849_v25, %v1935_v34 }
  0x5e   : > { %1434 = vrcp.f32 %v2088_v1  ;;  %v914_v45 = vmul.f32 %v850_v0, %v1952_v42  ;;  %v663_v46 = vmul.f32 0.008333334, %v2083_v29  ;;  %v2106_v14 = vmul.f32 %v2074_v19, %v2074_v19 }
  0x5f   : > { %v1421_v39 = vpop.eup %1420  ;;  %1167 = vst [vmem:[%s2043_s17 + $0x28] sm:$0xff] %v1103_v28  ;;  %1436 = vpow2.f32 %v230_v36  ;;  %v915_v54 = vmul.f32 %v851_v30, %v1960_v47  ;;  %v916_v43 = vmul.f32 %v852_v6, %v1970_v51  ;;  %vm981_vm11 = vcmp.lt.f32.partialorder %v2028_v38, 0.0625 }
  0x60   : > { %v464_v40 = vsub.f32 %v2017_v41, %v1421_v39  ;;  %v853_v41 = vadd.f32 1.0, %v789_v2  ;;  %1438 = vpow2.f32 %v232_v27  ;;  %v726_v42 = vadd.f32 0.16666667, %v662_v12  ;;  %v2153_v2 = vld [vmem:[%s1864_s30 + $0x90] sm:$0xff] }
  0x61   : > { %v1423_v32 = vpop.eup %1422  ;;  %v727_v51 = vadd.f32 0.16666667, %v663_v46  ;;  %v664_v10 = vmul.f32 0.008333334, %v2106_v14  ;;  %v2166_v6 = vmul.f32 %v2122_v52, %v2122_v52  ;;  %v238_v12 = vmul.f32 1.442695, %v2153_v2 }
  0x62   : > { %v528_v48 = vmul.f32 0.5, %v464_v40  ;;  %v465_v49 = vsub.f32 %v2030_v53, %v1423_v32  ;;  %v2117_v53 = vmul.f32 %v2086_v31, %v2086_v31  ;;  %v917_v7 = vmul.f32 %v853_v41, %v1997_v15  ;;  %v2140_v15 = vld [vmem:[%s1864_s30 + $0x88] sm:$0xff]  ;;  %v2170_v40 = vld [vmem:[%s1864_s30 + $0x98] sm:$0xff] }
  0x63   : > { %v1425_v34 = vpop.eup %1424  ;;  %v790_v9 = vmul.f32 %v726_v42, %v2071_v23  ;;  %v728_v50 = vadd.f32 0.16666667, %v664_v10  ;;  %v236_v39 = vmul.f32 1.442695, %v2140_v15  ;;  %vm982_vm12 = vcmp.lt.f32.partialorder %v2071_v23, 0.0625 }
  0x64   : > { %v1427_v55 = vpop.eup %1426  ;;  %v1040_v56 = vsel %vm976_vm6, %v912_v22, %v528_v48  ;;  %v529_v57 = vmul.f32 0.5, %v465_v49  ;;  %v466_v4 = vsub.f32 %v2039_v62, %v1425_v34  ;;  %v665_v18 = vmul.f32 0.008333334, %v2117_v53 }
  0x65   : > { %v1429_v58 = vpop.eup %1428  ;;  %v1104_v60 = vadd.f32 1.0, %v1040_v56  ;;  %v467_v47 = vsub.f32 %v2049_v3, %v1427_v55  ;;  %v791_v22 = vmul.f32 %v727_v51, %v2083_v29  ;;  %v854_v27 = vadd.f32 1.0, %v790_v9 }
  0x66   : > { %v2124_v33 = vpop.eup %1430  ;;  %v1041_v11 = vsel %vm977_vm7, %v913_v44, %v529_v57  ;;  %v530_v62 = vmul.f32 0.5, %v466_v4  ;;  %v468_v63 = vsub.f32 %v2059_v13, %v1429_v58  ;;  %v234_v13 = vmul.f32 1.442695, %v2122_v52 }
  0x67   : > { %1168 = vst [vmem:[%s2043_s17 + $0x30] sm:$0xff] %v1104_v60  ;;  %v1105_v8 = vadd.f32 1.0, %v1041_v11  ;;  %v531_v3 = vmul.f32 0.5, %v467_v47  ;;  %1440 = vrcp.f32 %v2124_v33  ;;  %v2133_v59 = vpop.eup %1432  ;;  %v729_v36 = vadd.f32 0.16666667, %v665_v18 }
  0x68   : > { %v1042_v17 = vsel %vm978_vm8, %v914_v45, %v530_v62  ;;  %v532_v37 = vmul.f32 0.5, %v468_v63  ;;  %v1435_v20 = vpop.eup %1434  ;;  %1442 = vrcp.f32 %v2133_v59  ;;  %v855_v32 = vadd.f32 1.0, %v791_v22  ;;  %v2175_v45 = vld [vmem:[%s1864_s30 + $0xa0] sm:$0xff]  ;;  %v2235_v22 = vld [vmem:[%s1864_s30 + $0xb0] sm:$0xff] }
  0x69   : > { %1169 = vst [vmem:[%s2043_s17 + $0x38] sm:$0xff] %v1105_v8  ;;  %v1106_v21 = vadd.f32 1.0, %v1042_v17  ;;  %v1043_v24 = vsel %vm979_vm9, %v915_v54, %v531_v3  ;;  %v2146_v25 = vpop.eup %1436  ;;  %v469_v0 = vsub.f32 %v2088_v1, %v1435_v20  ;;  %v792_v1 = vmul.f32 %v728_v50, %v2106_v14 }
  0x6a   : > { %v1107_v26 = vadd.f32 1.0, %v1043_v24  ;;  %v1044_v28 = vsel %vm980_vm10, %v916_v43, %v532_v37  ;;  %1444 = vrcp.f32 %v2146_v25  ;;  %v2158_v30 = vpop.eup %1438  ;;  %v793_v48 = vmul.f32 %v729_v36, %v2117_v53 }
  0x6b   : > { %1170 = vst [vmem:[%s2043_s17 + $0x40] sm:$0xff] %v1106_v21  ;;  %v1108_v61 = vadd.f32 1.0, %v1044_v28  ;;  %v533_v5 = vmul.f32 0.5, %v469_v0  ;;  %1446 = vpow2.f32 %v234_v13  ;;  %v2180_v49 = vmul.f32 %v2140_v15, %v2140_v15 }
  0x6c   : > { %1171 = vst [vmem:[%s2043_s17 + $0x48] sm:$0xff] %v1107_v26  ;;  %1448 = vrcp.f32 %v2158_v30  ;;  %v2185_v41 = vmul.f32 %v2153_v2, %v2153_v2  ;;  %v240_v38 = vmul.f32 1.442695, %v2170_v40  ;;  %v856_v54 = vadd.f32 1.0, %v792_v1  ;;  %v2228_v26 = vld [vmem:[%s1864_s30 + $0xa8] sm:$0xff] }
  0x6d   : > { %1172 = vst [vmem:[%s2043_s17 + $0x50] sm:$0xff] %v1108_v61  ;;  %v1045_v44 = vsel %vm981_vm11, %v917_v7, %v533_v5  ;;  %1450 = vpow2.f32 %v236_v39  ;;  %v666_v43 = vmul.f32 0.008333334, %v2166_v6  ;;  %v2192_v42 = vmul.f32 %v2170_v40, %v2170_v40  ;;  %v2240_v39 = vld [vmem:[%s1864_s30 + $0xb8] sm:$0xff] }
  0x6e   : > { %v1109_v46 = vadd.f32 1.0, %v1045_v44  ;;  %1452 = vpow2.f32 %v238_v12  ;;  %v242_v55 = vmul.f32 1.442695, %v2175_v45  ;;  %v918_v57 = vmul.f32 %v854_v27, %v2021_v35 }
  0x6f   : > { %vm983_vm13 = vcmp.lt.f32.partialorder %v2083_v29, 0.0625  ;;  %vm984_vm14 = vcmp.lt.f32.partialorder %v2106_v14, 0.0625  ;;  %v919_v58 = vmul.f32 %v855_v32, %v2057_v16  ;;  %v857_v60 = vadd.f32 1.0, %v793_v48 }
  0x70   : > { %1173 = vst [vmem:[%s2043_s17 + $0x58] sm:$0xff] %v1109_v46  ;;  %v667_v47 = vmul.f32 0.008333334, %v2180_v49  ;;  %1454 = vpow2.f32 %v240_v38  ;;  %vm985_vm15 = vcmp.lt.f32.partialorder %v2117_v53, 0.0625  ;;  %v920_v35 = vmul.f32 %v856_v54, %v2074_v19  ;;  %v2253_v46 = vld [vmem:[%s1864_s30 + $0xc0] sm:$0xff] }
  0x71   : > { %v1441_v34 = vpop.eup %1440  ;;  %v730_v62 = vadd.f32 0.16666667, %v666_v43  ;;  %v669_v63 = vmul.f32 0.008333334, %v2192_v42  ;;  %1456 = vpow2.f32 %v242_v55  ;;  %v2213_v9 = vmul.f32 %v2175_v45, %v2175_v45 }
  0x72   : > { %v470_v56 = vsub.f32 %v2124_v33, %v1441_v34  ;;  %v1443_v4 = vpop.eup %1442  ;;  %v668_v33 = vmul.f32 0.008333334, %v2185_v41  ;;  %v921_v17 = vmul.f32 %v857_v60, %v2086_v31  ;;  %v731_v37 = vadd.f32 0.16666667, %v667_v47 }
  0x73   : > { %v471_v10 = vsub.f32 %v2133_v59, %v1443_v4  ;;  %v794_v31 = vmul.f32 %v730_v62, %v2166_v6  ;;  %v670_v0 = vmul.f32 0.008333334, %v2213_v9  ;;  %vm986_vm0 = vcmp.lt.f32.partialorder %v2166_v6, 0.0625 }
  0x74   : > { %v534_v51 = vmul.f32 0.5, %v470_v56  ;;  %v1445_v11 = vpop.eup %1444  ;;  %v732_v21 = vadd.f32 0.16666667, %v668_v33  ;;  %v795_v36 = vmul.f32 %v731_v37, %v2180_v49  ;;  %v244_v5 = vmul.f32 1.442695, %v2228_v26  ;;  %v2284_v33 = vld [vmem:[%s1864_s30 + $0xc8] sm:$0xff] }
  0x75   : > { %v2206_v7 = vpop.eup %1446  ;;  %v535_v8 = vmul.f32 0.5, %v471_v10  ;;  %v472_v3 = vsub.f32 %v2146_v25, %v1445_v11  ;;  %v733_v25 = vadd.f32 0.16666667, %v669_v63  ;;  %v858_v44 = vadd.f32 1.0, %v794_v31 }
  0x76   : > { %v1046_v16 = vsel %vm982_vm12, %v918_v57, %v534_v51  ;;  %v1449_v59 = vpop.eup %1448  ;;  %1458 = vrcp.f32 %v2206_v7  ;;  %v796_v14 = vmul.f32 %v732_v21, %v2185_v41  ;;  %v246_v32 = vmul.f32 1.442695, %v2235_v22 }
  0x77   : > { %v1110_v19 = vadd.f32 1.0, %v1046_v16  ;;  %v2217_v18 = vpop.eup %1450  ;;  %v1047_v23 = vsel %vm983_vm13, %v919_v58, %v535_v8  ;;  %v536_v13 = vmul.f32 0.5, %v472_v3  ;;  %v473_v20 = vsub.f32 %v2158_v30, %v1449_v59 }
  0x78   : > { %v2222_v24 = vpop.eup %1452  ;;  %v1111_v50 = vadd.f32 1.0, %v1047_v23  ;;  %1460 = vrcp.f32 %v2217_v18  ;;  %v797_v27 = vmul.f32 %v733_v25, %v2192_v42  ;;  %vm987_vm1 = vcmp.lt.f32.partialorder %v2180_v49, 0.0625 }
  0x79   : > { %1174 = vst [vmem:[%s2043_s17 + $0x60] sm:$0xff] %v1110_v19  ;;  %v1048_v29 = vsel %vm984_vm14, %v920_v35, %v536_v13  ;;  %v537_v28 = vmul.f32 0.5, %v473_v20  ;;  %1462 = vrcp.f32 %v2222_v24  ;;  %v734_v53 = vadd.f32 0.16666667, %v670_v0  ;;  %v2316_v0 = vld [vmem:[%s1864_s30 + $0xd8] sm:$0xff] }
  0x7a   : > { %1175 = vst [vmem:[%s2043_s17 + $0x68] sm:$0xff] %v1111_v50  ;;  %v1112_v61 = vadd.f32 1.0, %v1048_v29  ;;  %v2247_v1 = vpop.eup %1454  ;;  %v248_v48 = vmul.f32 1.442695, %v2240_v39  ;;  %v859_v34 = vadd.f32 1.0, %v795_v36  ;;  %vm988_vm2 = vcmp.lt.f32.partialorder %v2185_v41, 0.0625 }
  0x7b   : > { %v1049_v30 = vsel %vm985_vm15, %v921_v17, %v537_v28  ;;  %1464 = vrcp.f32 %v2247_v1  ;;  %v2258_v38 = vpop.eup %1456  ;;  %v2264_v54 = vmul.f32 %v2228_v26, %v2228_v26  ;;  %v860_v43 = vadd.f32 1.0, %v796_v14  ;;  %v2307_v50 = vld [vmem:[%s1864_s30 + $0xd0] sm:$0xff] }
  0x7c   : > { %1176 = vst [vmem:[%s2043_s17 + $0x70] sm:$0xff] %v1112_v61  ;;  %v1113_v12 = vadd.f32 1.0, %v1049_v30  ;;  %1466 = vpow2.f32 %v244_v5  ;;  %v2269_v55 = vmul.f32 %v2235_v22, %v2235_v22  ;;  %v250_v56 = vmul.f32 1.442695, %v2253_v46 }
  0x7d   : > { %1468 = vrcp.f32 %v2258_v38  ;;  %v922_v4 = vmul.f32 %v858_v44, %v2122_v52  ;;  %v861_v58 = vadd.f32 1.0, %v797_v27  ;;  %v2275_v60 = vmul.f32 %v2240_v39, %v2240_v39 }
  0x7e   : > { %1177 = vst [vmem:[%s2043_s17 + $0x78] sm:$0xff] %v1113_v12  ;;  %1470 = vpow2.f32 %v246_v32  ;;  %v798_v51 = vmul.f32 %v734_v53, %v2213_v9  ;;  %v2281_v10 = vmul.f32 %v2253_v46, %v2253_v46  ;;  %v923_v52 = vmul.f32 %v859_v34, %v2140_v15 }
  0x7f   : > { %1472 = vpow2.f32 %v248_v48  ;;  %vm989_vm3 = vcmp.lt.f32.partialorder %v2192_v42, 0.0625  ;;  %v671_v35 = vmul.f32 0.008333334, %v2264_v54  ;;  %v924_v16 = vmul.f32 %v860_v43, %v2153_v2 }
  0x80   : > { %v1459_v57 = vpop.eup %1458  ;;  %1474 = vpow2.f32 %v250_v56  ;;  %v672_v8 = vmul.f32 0.008333334, %v2269_v55  ;;  %v925_v59 = vmul.f32 %v861_v58, %v2170_v40  ;;  %v673_v15 = vmul.f32 0.008333334, %v2275_v60  ;;  %v2346_v58 = vld [vmem:[%s1864_s30 + $0xe0] sm:$0xff] }
  0x81   : > { %v474_v47 = vsub.f32 %v2206_v7, %v1459_v57  ;;  %v252_v19 = vmul.f32 1.442695, %v2284_v33  ;;  %v862_v23 = vadd.f32 1.0, %v798_v51  ;;  %vm990_vm4 = vcmp.lt.f32.partialorder %v2213_v9, 0.0625  ;;  %v2351_v51 = vld [vmem:[%s1864_s30 + $0xe8] sm:$0xff] }
  0x82   : > { %v1461_v11 = vpop.eup %1460  ;;  %v735_v20 = vadd.f32 0.16666667, %v671_v35  ;;  %v2304_v6 = vmul.f32 %v2284_v33, %v2284_v33  ;;  %v737_v28 = vadd.f32 0.16666667, %v673_v15  ;;  %v256_v53 = vmul.f32 1.442695, %v2316_v0 }
  0x83   : > { %v1463_v62 = vpop.eup %1462  ;;  %v538_v63 = vmul.f32 0.5, %v474_v47  ;;  %v475_v7 = vsub.f32 %v2217_v18, %v1461_v11  ;;  %v674_v18 = vmul.f32 0.008333334, %v2281_v10  ;;  %1476 = vpow2.f32 %v252_v19  ;;  %v2374_v19 = vld [vmem:[%s1864_s30 + $0xf0] sm:$0xff] }
  0x84   : > { %v476_v3 = vsub.f32 %v2222_v24, %v1463_v62  ;;  %v736_v24 = vadd.f32 0.16666667, %v672_v8  ;;  %v926_v30 = vmul.f32 %v862_v23, %v2175_v45  ;;  %v675_v44 = vmul.f32 0.008333334, %v2304_v6 }
  0x85   : > { %v1050_v17 = vsel %vm986_vm0, %v922_v4, %v538_v63  ;;  %v539_v37 = vmul.f32 0.5, %v475_v7  ;;  %v1465_v40 = vpop.eup %1464  ;;  %v738_v14 = vadd.f32 0.16666667, %v674_v18  ;;  %v799_v32 = vmul.f32 %v735_v20, %v2264_v54 }
  0x86   : > { %v1114_v2 = vadd.f32 1.0, %v1050_v17  ;;  %v540_v13 = vmul.f32 0.5, %v476_v3  ;;  %v2309_v31 = vpop.eup %1466  ;;  %v477_v49 = vsub.f32 %v2247_v1, %v1465_v40  ;;  %v254_v1 = vmul.f32 1.442695, %v2307_v50 }
  0x87   : > { %v1051_v21 = vsel %vm987_vm1, %v923_v52, %v539_v37  ;;  %v1469_v61 = vpop.eup %1468  ;;  %1478 = vrcp.f32 %v2309_v31  ;;  %v800_v45 = vmul.f32 %v736_v24, %v2269_v55  ;;  %v801_v43 = vmul.f32 %v737_v28, %v2275_v60 }
  0x88   : > { %1178 = vst [vmem:[%s2043_s17 + $0x80] sm:$0xff] %v1114_v2  ;;  %v1115_v25 = vadd.f32 1.0, %v1051_v21  ;;  %v1052_v29 = vsel %vm988_vm2, %v924_v16, %v540_v13  ;;  %v2320_v5 = vpop.eup %1470  ;;  %v541_v12 = vmul.f32 0.5, %v477_v49  ;;  %v478_v41 = vsub.f32 %v2258_v38, %v1469_v61 }
  0x89   : > { %v1116_v36 = vadd.f32 1.0, %v1052_v29  ;;  %v2326_v27 = vpop.eup %1472  ;;  %1480 = vrcp.f32 %v2320_v5  ;;  %v802_v57 = vmul.f32 %v738_v14, %v2281_v10  ;;  %v2343_v4 = vmul.f32 %v2307_v50, %v2307_v50 }
  0x8a   : > { %1179 = vst [vmem:[%s2043_s17 + $0x88] sm:$0xff] %v1115_v25  ;;  %v2333_v48 = vpop.eup %1474  ;;  %v1053_v38 = vsel %vm989_vm3, %v925_v59, %v541_v12  ;;  %v542_v34 = vmul.f32 0.5, %v478_v41  ;;  %1482 = vrcp.f32 %v2326_v27  ;;  %v739_v47 = vadd.f32 0.16666667, %v675_v44 }
  0x8b   : > { %1180 = vst [vmem:[%s2043_s17 + $0x90] sm:$0xff] %v1116_v36  ;;  %v1117_v56 = vadd.f32 1.0, %v1053_v38  ;;  %1484 = vrcp.f32 %v2333_v48  ;;  %vm991_vm5 = vcmp.lt.f32.partialorder %v2264_v54, 0.0625  ;;  %v2357_v52 = vmul.f32 %v2316_v0, %v2316_v0 }
  0x8c   : > { %v1054_v42 = vsel %vm990_vm4, %v926_v30, %v542_v34  ;;  %1486 = vpow2.f32 %v254_v1  ;;  %v863_v35 = vadd.f32 1.0, %v799_v32  ;;  %v864_v62 = vadd.f32 1.0, %v800_v45  ;;  %v2407_v32 = vld [vmem:[%s1864_s30 + $0xf8] sm:$0xff] }
  0x8d   : > { %1181 = vst [vmem:[%s2043_s17 + $0x98] sm:$0xff] %v1117_v56  ;;  %v1118_v11 = vadd.f32 1.0, %v1054_v42  ;;  %1488 = vpow2.f32 %v256_v53  ;;  %vm992_vm6 = vcmp.lt.f32.partialorder %v2269_v55, 0.0625  ;;  %v258_v9 = vmul.f32 1.442695, %v2346_v58  ;;  %v2361_v63 = vpop.eup %1476  ;;  %v2417_v56 = vld [vmem:[%s1864_s30 + $0x100] sm:$0xff] }
  0x8e   : > { %v865_v7 = vadd.f32 1.0, %v801_v43  ;;  %v866_v16 = vadd.f32 1.0, %v802_v57  ;;  %v676_v8 = vmul.f32 0.008333334, %v2343_v4  ;;  %v260_v3 = vmul.f32 1.442695, %v2351_v51 }
  0x8f   : > { %1182 = vst [vmem:[%s2043_s17 + $0xa0] sm:$0xff] %v1118_v11  ;;  %vm993_vm7 = vcmp.lt.f32.partialorder %v2275_v60, 0.0625  ;;  %1490 = vrcp.f32 %v2361_v63  ;;  %v803_v59 = vmul.f32 %v739_v47, %v2304_v6  ;;  %v2371_v15 = vmul.f32 %v2346_v58, %v2346_v58 }
  0x90   : > { %vm994_vm8 = vcmp.lt.f32.partialorder %v2281_v10, 0.0625  ;;  %v677_v37 = vmul.f32 0.008333334, %v2357_v52  ;;  %1492 = vpow2.f32 %v258_v9  ;;  %v2380_v23 = vmul.f32 %v2351_v51, %v2351_v51 }
  0x91   : > { %v1479_v17 = vpop.eup %1478  ;;  %v927_v2 = vmul.f32 %v863_v35, %v2228_v26  ;;  %v928_v13 = vmul.f32 %v864_v62, %v2235_v22  ;;  %1494 = vpow2.f32 %v260_v3  ;;  %v929_v40 = vmul.f32 %v865_v7, %v2240_v39  ;;  %v2424_v35 = vld [vmem:[%s1864_s30 + $0x108] sm:$0xff] }
  0x92   : > { %v479_v18 = vsub.f32 %v2309_v31, %v1479_v17  ;;  %v930_v21 = vmul.f32 %v866_v16, %v2253_v46  ;;  %v740_v24 = vadd.f32 0.16666667, %v676_v8  ;;  %v262_v25 = vmul.f32 1.442695, %v2374_v19 }
  0x93   : > { %v1481_v20 = vpop.eup %1480  ;;  %v867_v61 = vadd.f32 1.0, %v803_v59  ;;  %vm995_vm9 = vcmp.lt.f32.partialorder %v2304_v6, 0.0625  ;;  %v678_v26 = vmul.f32 0.008333334, %v2371_v15  ;;  %v741_v36 = vadd.f32 0.16666667, %v677_v37 }
  0x94   : > { %v1483_v29 = vpop.eup %1482  ;;  %v543_v49 = vmul.f32 0.5, %v479_v18  ;;  %v480_v28 = vsub.f32 %v2320_v5, %v1481_v20  ;;  %v679_v39 = vmul.f32 0.008333334, %v2380_v23  ;;  %1496 = vpow2.f32 %v262_v25  ;;  %v2448_v18 = vld [vmem:[%s1864_s30 + $0x110] sm:$0xff] }
  0x95   : > { %v1485_v22 = vpop.eup %1484  ;;  %v481_v31 = vsub.f32 %v2326_v27, %v1483_v29  ;;  %v2400_v12 = vmul.f32 %v2374_v19, %v2374_v19  ;;  %v804_v27 = vmul.f32 %v740_v24, %v2343_v4  ;;  %v742_v53 = vadd.f32 0.16666667, %v678_v26 }
  0x96   : > { %v2393_v46 = vpop.eup %1486  ;;  %v1055_v30 = vsel %vm991_vm5, %v927_v2, %v543_v49  ;;  %v544_v14 = vmul.f32 0.5, %v480_v28  ;;  %v482_v5 = vsub.f32 %v2333_v48, %v1485_v22  ;;  %v931_v34 = vmul.f32 %v867_v61, %v2284_v33 }
  0x97   : > { %v2402_v41 = vpop.eup %1488  ;;  %v1119_v44 = vadd.f32 1.0, %v1055_v30  ;;  %v545_v1 = vmul.f32 0.5, %v481_v31  ;;  %1498 = vrcp.f32 %v2393_v46  ;;  %v743_v43 = vadd.f32 0.16666667, %v679_v39 }
  0x98   : > { %v1056_v54 = vsel %vm992_vm6, %v928_v13, %v544_v14  ;;  %v546_v45 = vmul.f32 0.5, %v482_v5  ;;  %1500 = vrcp.f32 %v2402_v41  ;;  %v680_v47 = vmul.f32 0.008333334, %v2400_v12 }
  0x99   : > { %1183 = vst [vmem:[%s2043_s17 + $0xa8] sm:$0xff] %v1119_v44  ;;  %v1120_v48 = vadd.f32 1.0, %v1056_v54  ;;  %v1057_v38 = vsel %vm993_vm7, %v929_v40, %v545_v1  ;;  %v1491_v57 = vpop.eup %1490  ;;  %v264_v11 = vmul.f32 1.442695, %v2407_v32  ;;  %v868_v9 = vadd.f32 1.0, %v804_v27 }
  0x9a   : > { %v1121_v55 = vadd.f32 1.0, %v1057_v38  ;;  %v1058_v42 = vsel %vm994_vm8, %v930_v21, %v546_v45  ;;  %v2426_v60 = vpop.eup %1492  ;;  %v483_v62 = vsub.f32 %v2361_v63, %v1491_v57  ;;  %v805_v7 = vmul.f32 %v741_v36, %v2357_v52  ;;  %v2474_v36 = vld [vmem:[%s1864_s30 + $0x118] sm:$0xff] }
  0x9b   : > { %1184 = vst [vmem:[%s2043_s17 + $0xb0] sm:$0xff] %v1120_v48  ;;  %v1122_v33 = vadd.f32 1.0, %v1058_v42  ;;  %v2431_v16 = vpop.eup %1494  ;;  %vm996_vm10 = vcmp.lt.f32.partialorder %v2343_v4, 0.0625  ;;  %1502 = vrcp.f32 %v2426_v60  ;;  %v806_v10 = vmul.f32 %v742_v53, %v2371_v15 }
  0x9c   : > { %1185 = vst [vmem:[%s2043_s17 + $0xb8] sm:$0xff] %v1121_v55  ;;  %v266_v8 = vmul.f32 1.442695, %v2417_v56  ;;  %v547_v3 = vmul.f32 0.5, %v483_v62  ;;  %1504 = vrcp.f32 %v2431_v16  ;;  %v807_v63 = vmul.f32 %v743_v43, %v2380_v23 }
  0x9d   : > { %1186 = vst [vmem:[%s2043_s17 + $0xc0] sm:$0xff] %v1122_v33  ;;  %v268_v59 = vmul.f32 1.442695, %v2424_v35  ;;  %vm997_vm11 = vcmp.lt.f32.partialorder %v2357_v52, 0.0625  ;;  %v744_v17 = vadd.f32 0.16666667, %v680_v47  ;;  %1506 = vpow2.f32 %v264_v11 }
  0x9e   : > { %v2445_v37 = vmul.f32 %v2407_v32, %v2407_v32  ;;  %v2450_v2 = vpop.eup %1496  ;;  %v1059_v13 = vsel %vm995_vm9, %v931_v34, %v547_v3  ;;  %v932_v20 = vmul.f32 %v868_v9, %v2307_v50  ;;  %v869_v40 = vadd.f32 1.0, %v805_v7 }
  0x9f   : > { %1508 = vpow2.f32 %v266_v8  ;;  %v1123_v21 = vadd.f32 1.0, %v1059_v13  ;;  %v870_v24 = vadd.f32 1.0, %v806_v10  ;;  %v2458_v25 = vmul.f32 %v2417_v56, %v2417_v56 }
  0xa0   : > { %1510 = vrcp.f32 %v2450_v2  ;;  %v871_v49 = vadd.f32 1.0, %v807_v63  ;;  %v2462_v6 = vmul.f32 %v2424_v35, %v2424_v35  ;;  %v270_v50 = vmul.f32 1.442695, %v2448_v18 }
  0xa1   : > { %v1499_v29 = vpop.eup %1498  ;;  %1512 = vpow2.f32 %v268_v59  ;;  %1187 = vst [vmem:[%s2043_s17 + $0xc8] sm:$0xff] %v1123_v21  ;;  %v808_v26 = vmul.f32 %v744_v17, %v2400_v12  ;;  %v681_v22 = vmul.f32 0.008333334, %v2445_v37  ;;  %v2471_v31 = vmul.f32 %v2448_v18, %v2448_v18  ;;  %v2517_v59 = vld [vmem:[%s1864_s30 + $0x128] sm:$0xff]  ;;  %v2520_v17 = vld [vmem:[%s1864_s30 + $0x130] sm:$0xff] }
  0xa2   : > { %v1501_v28 = vpop.eup %1500  ;;  %v484_v61 = vsub.f32 %v2393_v46, %v1499_v29  ;;  %v933_v30 = vmul.f32 %v869_v40, %v2316_v0  ;;  %vm998_vm12 = vcmp.lt.f32.partialorder %v2371_v15, 0.0625  ;;  %1514 = vpow2.f32 %v270_v50 }
  0xa3   : > { %v485_v39 = vsub.f32 %v2402_v41, %v1501_v28  ;;  %v934_v46 = vmul.f32 %v870_v24, %v2346_v58  ;;  %vm999_vm13 = vcmp.lt.f32.partialorder %v2380_v23, 0.0625  ;;  %v682_v5 = vmul.f32 0.008333334, %v2458_v25 }
  0xa4   : > { %v548_v14 = vmul.f32 0.5, %v484_v61  ;;  %v935_v1 = vmul.f32 %v871_v49, %v2351_v51  ;;  %v683_v27 = vmul.f32 0.008333334, %v2462_v6  ;;  %v272_v54 = vmul.f32 1.442695, %v2474_v36 }
  0xa5   : > { %v549_v44 = vmul.f32 0.5, %v485_v39  ;;  %v1503_v41 = vpop.eup %1502  ;;  %v872_v45 = vadd.f32 1.0, %v808_v26  ;;  %v745_v53 = vadd.f32 0.16666667, %v681_v22  ;;  %v684_v58 = vmul.f32 0.008333334, %v2471_v31 }
  0xa6   : > { %v1060_v0 = vsel %vm996_vm10, %v932_v20, %v548_v14  ;;  %v1505_v48 = vpop.eup %1504  ;;  %v486_v51 = vsub.f32 %v2426_v60, %v1503_v41  ;;  %v2493_v43 = vmul.f32 %v2474_v36, %v2474_v36  ;;  %vm1000_vm14 = vcmp.lt.f32.partialorder %v2400_v12, 0.0625  ;;  %v2504_v60 = vld [vmem:[%s1864_s30 + $0x120] sm:$0xff]  ;;  %v2544_v26 = vld [vmem:[%s1864_s30 + $0x138] sm:$0xff] }
  0xa7   : > { %v1124_v38 = vadd.f32 1.0, %v1060_v0  ;;  %v1061_v34 = vsel %vm997_vm11, %v933_v30, %v549_v44  ;;  %v2495_v4 = vpop.eup %1506  ;;  %v487_v55 = vsub.f32 %v2431_v16, %v1505_v48  ;;  %1516 = vpow2.f32 %v272_v54 }
  0xa8   : > { %v1125_v57 = vadd.f32 1.0, %v1061_v34  ;;  %v550_v52 = vmul.f32 0.5, %v486_v51  ;;  %1518 = vrcp.f32 %v2495_v4  ;;  %v746_v47 = vadd.f32 0.16666667, %v682_v5 }
  0xa9   : > { %v2499_v42 = vpop.eup %1508  ;;  %1188 = vst [vmem:[%s2043_s17 + $0xd0] sm:$0xff] %v1124_v38  ;;  %v747_v11 = vadd.f32 0.16666667, %v683_v27  ;;  %v551_v62 = vmul.f32 0.5, %v487_v55  ;;  %v936_v9 = vmul.f32 %v872_v45, %v2374_v19  ;;  %v748_v7 = vadd.f32 0.16666667, %v684_v58 }
  0xaa   : > { %v1511_v33 = vpop.eup %1510  ;;  %1189 = vst [vmem:[%s2043_s17 + $0xd8] sm:$0xff] %v1125_v57  ;;  %1520 = vrcp.f32 %v2499_v42  ;;  %v1062_v10 = vsel %vm998_vm12, %v934_v46, %v550_v52  ;;  %v809_v3 = vmul.f32 %v745_v53, %v2445_v37  ;;  %v685_v63 = vmul.f32 0.008333334, %v2493_v43  ;;  %v2552_v46 = vld [vmem:[%s1864_s30 + $0x140] sm:$0xff] }
  0xab   : > { %v2509_v16 = vpop.eup %1512  ;;  %v488_v8 = vsub.f32 %v2450_v2, %v1511_v33  ;;  %v1126_v19 = vadd.f32 1.0, %v1062_v10  ;;  %v1063_v13 = vsel %vm999_vm13, %v935_v1, %v551_v62  ;;  %v274_v15 = vmul.f32 1.442695, %v2504_v60 }
  0xac   : > { %1522 = vrcp.f32 %v2509_v16  ;;  %v2526_v20 = vpop.eup %1514  ;;  %v1127_v2 = vadd.f32 1.0, %v1063_v13  ;;  %vm1001_vm15 = vcmp.lt.f32.partialorder %v2445_v37, 0.0625  ;;  %v810_v21 = vmul.f32 %v746_v47, %v2458_v25 }
  0xad   : > { %v552_v40 = vmul.f32 0.5, %v488_v8  ;;  %v811_v24 = vmul.f32 %v747_v11, %v2462_v6  ;;  %1190 = vst [vmem:[%s2043_s17 + $0xe0] sm:$0xff] %v1126_v19  ;;  %1524 = vrcp.f32 %v2526_v20  ;;  %v812_v23 = vmul.f32 %v748_v7, %v2471_v31 }
  0xae   : > { %v276_v29 = vmul.f32 1.442695, %v2517_v59  ;;  %v278_v49 = vmul.f32 1.442695, %v2520_v17  ;;  %1191 = vst [vmem:[%s2043_s17 + $0xe8] sm:$0xff] %v1127_v2  ;;  %1526 = vpow2.f32 %v274_v15  ;;  %v2541_v61 = vmul.f32 %v2504_v60, %v2504_v60  ;;  %v2597_v15 = vld [vmem:[%s1864_s30 + $0x148] sm:$0xff] }
  0xaf   : > { %v1064_v50 = vsel %vm1000_vm14, %v936_v9, %v552_v40  ;;  %v749_v28 = vadd.f32 0.16666667, %v685_v63  ;;  %v873_v39 = vadd.f32 1.0, %v809_v3  ;;  %v2548_v30 = vmul.f32 %v2517_v59, %v2517_v59 }
  0xb0   : > { %v1128_v22 = vadd.f32 1.0, %v1064_v50  ;;  %1528 = vpow2.f32 %v276_v29  ;;  %v874_v14 = vadd.f32 1.0, %v810_v21  ;;  %vm1002_vm0 = vcmp.lt.f32.partialorder %v2458_v25, 0.0625 }
  0xb1   : > { %v875_v12 = vadd.f32 1.0, %v811_v24  ;;  %1530 = vpow2.f32 %v278_v49  ;;  %v2554_v5 = vpop.eup %1516  ;;  %vm1003_vm1 = vcmp.lt.f32.partialorder %v2462_v6, 0.0625  ;;  %v876_v44 = vadd.f32 1.0, %v812_v23  ;;  %v2610_v23 = vld [vmem:[%s1864_s30 + $0x150] sm:$0xff] }
  0xb2   : > { %1192 = vst [vmem:[%s2043_s17 + $0xf0] sm:$0xff] %v1128_v22  ;;  %v2560_v1 = vmul.f32 %v2520_v17, %v2520_v17  ;;  %v280_v27 = vmul.f32 1.442695, %v2544_v26  ;;  %v1519_v54 = vpop.eup %1518  ;;  %vm1004_vm2 = vcmp.lt.f32.partialorder %v2471_v31, 0.0625  ;;  %1532 = vrcp.f32 %v2554_v5 }
  0xb3   : > { %v813_v41 = vmul.f32 %v749_v28, %v2493_v43  ;;  %v686_v0 = vmul.f32 0.008333334, %v2541_v61  ;;  %v489_v53 = vsub.f32 %v2495_v4, %v1519_v54  ;;  %v937_v58 = vmul.f32 %v873_v39, %v2407_v32 }
  0xb4   : > { %v1521_v45 = vpop.eup %1520  ;;  %v687_v48 = vmul.f32 0.008333334, %v2548_v30  ;;  %v282_v38 = vmul.f32 1.442695, %v2552_v46  ;;  %v938_v51 = vmul.f32 %v874_v14, %v2417_v56  ;;  %v939_v57 = vmul.f32 %v875_v12, %v2424_v35 }
  0xb5   : > { %v490_v34 = vsub.f32 %v2499_v42, %v1521_v45  ;;  %1534 = vpow2.f32 %v280_v27  ;;  %v553_v52 = vmul.f32 0.5, %v489_v53  ;;  %v940_v47 = vmul.f32 %v876_v44, %v2448_v18 }
  0xb6   : > { %v1523_v55 = vpop.eup %1522  ;;  %v688_v11 = vmul.f32 0.008333334, %v2560_v1  ;;  %v2578_v32 = vmul.f32 %v2544_v26, %v2544_v26  ;;  %v877_v62 = vadd.f32 1.0, %v813_v41  ;;  %v750_v42 = vadd.f32 0.16666667, %v686_v0 }
  0xb7   : > { %v554_v4 = vmul.f32 0.5, %v490_v34  ;;  %v491_v33 = vsub.f32 %v2509_v16, %v1523_v55  ;;  %v1525_v56 = vpop.eup %1524  ;;  %v1065_v35 = vsel %vm1001_vm15, %v937_v58, %v553_v52  ;;  %v751_v9 = vadd.f32 0.16666667, %v687_v48  ;;  %v2643_v34 = vld [vmem:[%s1864_s30 + $0x160] sm:$0xff] }
  0xb8   : > { %1536 = vpow2.f32 %v282_v38  ;;  %v2585_v18 = vmul.f32 %v2552_v46, %v2552_v46  ;;  %v2587_v7 = vpop.eup %1526  ;;  %v1129_v10 = vadd.f32 1.0, %v1065_v35  ;;  %v492_v3 = vsub.f32 %v2526_v20, %v1525_v56 }
  0xb9   : > { %v1066_v16 = vsel %vm1002_vm0, %v938_v51, %v554_v4  ;;  %v555_v8 = vmul.f32 0.5, %v491_v33  ;;  %1538 = vrcp.f32 %v2587_v7  ;;  %v752_v19 = vadd.f32 0.16666667, %v688_v11 }
  0xba   : > { %v2592_v63 = vpop.eup %1528  ;;  %v1130_v37 = vadd.f32 1.0, %v1066_v16  ;;  %v689_v13 = vmul.f32 0.008333334, %v2578_v32  ;;  %1193 = vst [vmem:[%s2043_s17 + $0xf8] sm:$0xff] %v1129_v10  ;;  %v556_v40 = vmul.f32 0.5, %v492_v3  ;;  %v814_v20 = vmul.f32 %v750_v42, %v2541_v61  ;;  %v2664_v16 = vld [vmem:[%s1864_s30 + $0x168] sm:$0xff] }
  0xbb   : > { %v2599_v2 = vpop.eup %1530  ;;  %v1067_v25 = vsel %vm1003_vm1, %v939_v57, %v555_v8  ;;  %1540 = vrcp.f32 %v2592_v63  ;;  %v690_v24 = vmul.f32 0.008333334, %v2585_v18  ;;  %v941_v49 = vmul.f32 %v877_v62, %v2474_v36  ;;  %v2625_v36 = vld [vmem:[%s1864_s30 + $0x158] sm:$0xff] }
  0xbc   : > { %1194 = vst [vmem:[%s2043_s17 + $0x100] sm:$0xff] %v1130_v37  ;;  %v1131_v21 = vadd.f32 1.0, %v1067_v25  ;;  %1542 = vrcp.f32 %v2599_v2  ;;  %v1533_v29 = vpop.eup %1532  ;;  %v1068_v6 = vsel %vm1004_vm2, %v940_v47, %v556_v40  ;;  %v815_v50 = vmul.f32 %v751_v9, %v2548_v30 }
  0xbd   : > { %v284_v28 = vmul.f32 1.442695, %v2597_v15  ;;  %v1132_v22 = vadd.f32 1.0, %v1068_v6  ;;  %v493_v39 = vsub.f32 %v2554_v5, %v1533_v29  ;;  %v816_v14 = vmul.f32 %v752_v19, %v2560_v1  ;;  %v2682_v29 = vld [vmem:[%s1864_s30 + $0x170] sm:$0xff] }
  0xbe   : > { %1195 = vst [vmem:[%s2043_s17 + $0x108] sm:$0xff] %v1131_v21  ;;  %v753_v12 = vadd.f32 0.16666667, %v689_v13  ;;  %vm1005_vm3 = vcmp.lt.f32.partialorder %v2493_v43, 0.0625  ;;  %v878_v31 = vadd.f32 1.0, %v814_v20  ;;  %v2631_v5 = vmul.f32 %v2597_v15, %v2597_v15 }
  0xbf   : > { %v2620_v44 = vpop.eup %1534  ;;  %1544 = vpow2.f32 %v284_v28  ;;  %v286_v27 = vmul.f32 1.442695, %v2610_v23  ;;  %1196 = vst [vmem:[%s2043_s17 + $0x110] sm:$0xff] %v1132_v22  ;;  %v557_v54 = vmul.f32 0.5, %v493_v39  ;;  %v754_v41 = vadd.f32 0.16666667, %v690_v24 }
  0xc0   : > { %1546 = vrcp.f32 %v2620_v44  ;;  %vm1006_vm4 = vcmp.lt.f32.partialorder %v2541_v61, 0.0625  ;;  %v879_v0 = vadd.f32 1.0, %v815_v50  ;;  %v2636_v43 = vmul.f32 %v2610_v23, %v2610_v23 }
  0xc1   : > { %1548 = vpow2.f32 %v286_v27  ;;  %v1069_v53 = vsel %vm1005_vm3, %v941_v49, %v557_v54  ;;  %v880_v58 = vadd.f32 1.0, %v816_v14  ;;  %v817_v48 = vmul.f32 %v753_v12, %v2578_v32  ;;  %v2695_v14 = vld [vmem:[%s1864_s30 + $0x178] sm:$0xff] }
  0xc2   : > { %v2638_v45 = vpop.eup %1536  ;;  %v288_v38 = vmul.f32 1.442695, %v2625_v36  ;;  %v1133_v51 = vadd.f32 1.0, %v1069_v53  ;;  %vm1007_vm5 = vcmp.lt.f32.partialorder %v2548_v30, 0.0625  ;;  %vm1008_vm6 = vcmp.lt.f32.partialorder %v2560_v1, 0.0625 }
  0xc3   : > { %1550 = vrcp.f32 %v2638_v45  ;;  %v1539_v57 = vpop.eup %1538  ;;  %v942_v55 = vmul.f32 %v878_v31, %v2504_v60  ;;  %vm1009_vm7 = vcmp.lt.f32.partialorder %v2578_v32, 0.0625  ;;  %v818_v52 = vmul.f32 %v754_v41, %v2585_v18 }
  0xc4   : > { %v691_v47 = vmul.f32 0.008333334, %v2631_v5  ;;  %1552 = vpow2.f32 %v288_v38  ;;  %1197 = vst [vmem:[%s2043_s17 + $0x118] sm:$0xff] %v1133_v51  ;;  %v494_v4 = vsub.f32 %v2587_v7, %v1539_v57  ;;  %v943_v33 = vmul.f32 %v879_v0, %v2517_v59  ;;  %v2718_v51 = vld [vmem:[%s1864_s30 + $0x180] sm:$0xff] }
  0xc5   : > { %v1541_v11 = vpop.eup %1540  ;;  %v692_v62 = vmul.f32 0.008333334, %v2636_v43  ;;  %v290_v42 = vmul.f32 1.442695, %v2643_v34  ;;  %v944_v35 = vmul.f32 %v880_v58, %v2520_v17  ;;  %v881_v9 = vadd.f32 1.0, %v817_v48 }
  0xc6   : > { %v1543_v56 = vpop.eup %1542  ;;  %v495_v60 = vsub.f32 %v2592_v63, %v1541_v11  ;;  %v2661_v10 = vmul.f32 %v2625_v36, %v2625_v36  ;;  %v558_v8 = vmul.f32 0.5, %v494_v4  ;;  %vm1010_vm8 = vcmp.lt.f32.partialorder %v2585_v18, 0.0625 }
  0xc7   : > { %v496_v7 = vsub.f32 %v2599_v2, %v1543_v56  ;;  %1554 = vpow2.f32 %v290_v42  ;;  %v882_v3 = vadd.f32 1.0, %v818_v52  ;;  %v755_v37 = vadd.f32 0.16666667, %v691_v47  ;;  %v2724_v52 = vld [vmem:[%s1864_s30 + $0x188] sm:$0xff] }
  0xc8   : > { %v559_v59 = vmul.f32 0.5, %v495_v60  ;;  %v2670_v17 = vmul.f32 %v2643_v34, %v2643_v34  ;;  %v1070_v19 = vsel %vm1006_vm4, %v942_v55, %v558_v8  ;;  %v756_v25 = vadd.f32 0.16666667, %v692_v62 }
  0xc9   : > { %v2672_v63 = vpop.eup %1544  ;;  %v560_v13 = vmul.f32 0.5, %v496_v7  ;;  %v292_v2 = vmul.f32 1.442695, %v2664_v16  ;;  %v1134_v20 = vadd.f32 1.0, %v1070_v19  ;;  %v693_v24 = vmul.f32 0.008333334, %v2661_v10 }
  0xca   : > { %v1547_v40 = vpop.eup %1546  ;;  %v1071_v21 = vsel %vm1007_vm5, %v943_v33, %v559_v59  ;;  %1556 = vrcp.f32 %v2672_v63  ;;  %v945_v28 = vmul.f32 %v881_v9, %v2544_v26  ;;  %v819_v22 = vmul.f32 %v755_v37, %v2631_v5 }
  0xcb   : > { %v2684_v61 = vpop.eup %1548  ;;  %v1135_v6 = vadd.f32 1.0, %v1071_v21  ;;  %v1072_v49 = vsel %vm1008_vm6, %v944_v35, %v560_v13  ;;  %v497_v50 = vsub.f32 %v2620_v44, %v1547_v40  ;;  %1198 = vst [vmem:[%s2043_s17 + $0x120] sm:$0xff] %v1134_v20  ;;  %v694_v39 = vmul.f32 0.008333334, %v2670_v17  ;;  %v2751_v13 = vld [vmem:[%s1864_s30 + $0x190] sm:$0xff] }
  0xcc   : > { %v1136_v30 = vadd.f32 1.0, %v1072_v49  ;;  %1558 = vrcp.f32 %v2684_v61  ;;  %v820_v1 = vmul.f32 %v756_v25, %v2636_v43  ;;  %v294_v44 = vmul.f32 1.442695, %v2682_v29 }
  0xcd   : > { %v1551_v12 = vpop.eup %1550  ;;  %1199 = vst [vmem:[%s2043_s17 + $0x128] sm:$0xff] %v1135_v6  ;;  %v561_v31 = vmul.f32 0.5, %v497_v50  ;;  %1560 = vpow2.f32 %v292_v2  ;;  %v946_v54 = vmul.f32 %v882_v3, %v2552_v46  ;;  %v757_v41 = vadd.f32 0.16666667, %v693_v24 }
  0xce   : > { %v2700_v26 = vpop.eup %1552  ;;  %1200 = vst [vmem:[%s2043_s17 + $0x130] sm:$0xff] %v1136_v30  ;;  %v498_v27 = vsub.f32 %v2638_v45, %v1551_v12  ;;  %v2707_v0 = vmul.f32 %v2664_v16, %v2664_v16  ;;  %v2714_v58 = vmul.f32 %v2682_v29, %v2682_v29  ;;  %v296_v45 = vmul.f32 1.442695, %v2695_v14 }
  0xcf   : > { %v1073_v53 = vsel %vm1009_vm7, %v945_v28, %v561_v31  ;;  %1562 = vrcp.f32 %v2700_v26  ;;  %v758_v38 = vadd.f32 0.16666667, %v694_v39  ;;  %v883_v55 = vadd.f32 1.0, %v819_v22 }
  0xd0   : > { %v1137_v48 = vadd.f32 1.0, %v1073_v53  ;;  %v562_v46 = vmul.f32 0.5, %v498_v27  ;;  %1564 = vpow2.f32 %v294_v44  ;;  %vm1011_vm9 = vcmp.lt.f32.partialorder %v2631_v5, 0.0625  ;;  %v2779_v44 = vld [vmem:[%s1864_s30 + $0x198] sm:$0xff] }
  0xd1   : > { %v2720_v57 = vpop.eup %1554  ;;  %v884_v32 = vadd.f32 1.0, %v820_v1  ;;  %1566 = vpow2.f32 %v296_v45  ;;  %v821_v11 = vmul.f32 %v757_v41, %v2661_v10  ;;  %v695_v4 = vmul.f32 0.008333334, %v2707_v0 }
  0xd2   : > { %1201 = vst [vmem:[%s2043_s17 + $0x138] sm:$0xff] %v1137_v48  ;;  %v1074_v47 = vsel %vm1010_vm8, %v946_v54, %v562_v46  ;;  %1568 = vrcp.f32 %v2720_v57  ;;  %v696_v62 = vmul.f32 0.008333334, %v2714_v58  ;;  %v2735_v42 = vmul.f32 %v2695_v14, %v2695_v14 }
  0xd3   : > { %v1138_v33 = vadd.f32 1.0, %v1074_v47  ;;  %v298_v56 = vmul.f32 1.442695, %v2718_v51  ;;  %vm1012_vm10 = vcmp.lt.f32.partialorder %v2636_v43, 0.0625  ;;  %vm1013_vm11 = vcmp.lt.f32.partialorder %v2661_v10, 0.0625  ;;  %v2786_v43 = vld [vmem:[%s1864_s30 + $0x1a0] sm:$0xff] }
  0xd4   : > { %v1557_v60 = vpop.eup %1556  ;;  %v822_v18 = vmul.f32 %v758_v38, %v2670_v17  ;;  %v300_v35 = vmul.f32 1.442695, %v2724_v52  ;;  %v947_v8 = vmul.f32 %v883_v55, %v2597_v15  ;;  %v2747_v7 = vmul.f32 %v2718_v51, %v2718_v51 }
  0xd5   : > { %1202 = vst [vmem:[%s2043_s17 + $0x140] sm:$0xff] %v1138_v33  ;;  %v499_v9 = vsub.f32 %v2672_v63, %v1557_v60  ;;  %1570 = vpow2.f32 %v298_v56  ;;  %v948_v3 = vmul.f32 %v884_v32, %v2610_v23  ;;  %v885_v37 = vadd.f32 1.0, %v821_v11 }
  0xd6   : > { %v1559_v59 = vpop.eup %1558  ;;  %v759_v19 = vadd.f32 0.16666667, %v695_v4  ;;  %1572 = vpow2.f32 %v300_v35  ;;  %v760_v40 = vadd.f32 0.16666667, %v696_v62  ;;  %v697_v15 = vmul.f32 0.008333334, %v2735_v42 }
  0xd7   : > { %v2753_v25 = vpop.eup %1560  ;;  %v563_v2 = vmul.f32 0.5, %v499_v9  ;;  %v500_v63 = vsub.f32 %v2684_v61, %v1559_v59  ;;  %v886_v20 = vadd.f32 1.0, %v822_v18  ;;  %vm1014_vm12 = vcmp.lt.f32.partialorder %v2670_v17, 0.0625  ;;  %v2813_v18 = vld [vmem:[%s1864_s30 + $0x1a8] sm:$0xff] }
  0xd8   : > { %1574 = vrcp.f32 %v2753_v25  ;;  %v2761_v23 = vmul.f32 %v2724_v52, %v2724_v52  ;;  %v698_v61 = vmul.f32 0.008333334, %v2747_v7  ;;  %v302_v49 = vmul.f32 1.442695, %v2751_v13 }
  0xd9   : > { %v1563_v21 = vpop.eup %1562  ;;  %v1075_v24 = vsel %vm1011_vm9, %v947_v8, %v563_v2  ;;  %v564_v6 = vmul.f32 0.5, %v500_v63  ;;  %v949_v22 = vmul.f32 %v885_v37, %v2625_v36  ;;  %v823_v39 = vmul.f32 %v759_v19, %v2707_v0  ;;  %v2823_v37 = vld [vmem:[%s1864_s30 + $0x1b0] sm:$0xff] }
  0xda   : > { %v2767_v50 = vpop.eup %1564  ;;  %v1139_v28 = vadd.f32 1.0, %v1075_v24  ;;  %v501_v30 = vsub.f32 %v2700_v26, %v1563_v21  ;;  %v824_v31 = vmul.f32 %v760_v40, %v2714_v58  ;;  %v761_v1 = vadd.f32 0.16666667, %v697_v15 }
  0xdb   : > { %v2772_v12 = vpop.eup %1566  ;;  %v1076_v5 = vsel %vm1012_vm10, %v948_v3, %v564_v6  ;;  %1576 = vrcp.f32 %v2767_v50  ;;  %vm1015_vm13 = vcmp.lt.f32.partialorder %v2707_v0, 0.0625  ;;  %v699_v36 = vmul.f32 0.008333334, %v2761_v23 }
  0xdc   : > { %v1569_v27 = vpop.eup %1568  ;;  %1203 = vst [vmem:[%s2043_s17 + $0x148] sm:$0xff] %v1139_v28  ;;  %v1140_v26 = vadd.f32 1.0, %v1076_v5  ;;  %v565_v54 = vmul.f32 0.5, %v501_v30  ;;  %1578 = vrcp.f32 %v2772_v12  ;;  %v950_v53 = vmul.f32 %v886_v20, %v2643_v34 }
  0xdd   : > { %v502_v41 = vsub.f32 %v2720_v57, %v1569_v27  ;;  %v762_v45 = vadd.f32 0.16666667, %v698_v61  ;;  %1580 = vpow2.f32 %v302_v49  ;;  %v887_v46 = vadd.f32 1.0, %v823_v39 }
  0xde   : > { %1204 = vst [vmem:[%s2043_s17 + $0x150] sm:$0xff] %v1140_v26  ;;  %v1077_v48 = vsel %vm1013_vm11, %v949_v22, %v565_v54  ;;  %v2795_v38 = vmul.f32 %v2751_v13, %v2751_v13  ;;  %v304_v55 = vmul.f32 1.442695, %v2779_v44  ;;  %v825_v34 = vmul.f32 %v761_v1, %v2735_v42 }
  0xdf   : > { %v2798_v32 = vpop.eup %1570  ;;  %v1141_v57 = vadd.f32 1.0, %v1077_v48  ;;  %v566_v47 = vmul.f32 0.5, %v502_v41  ;;  %v306_v11 = vmul.f32 1.442695, %v2786_v43  ;;  %v888_v10 = vadd.f32 1.0, %v824_v31 }
  0xe0   : > { %v2802_v4 = vpop.eup %1572  ;;  %vm1016_vm14 = vcmp.lt.f32.partialorder %v2714_v58, 0.0625  ;;  %1582 = vrcp.f32 %v2798_v32  ;;  %v763_v33 = vadd.f32 0.16666667, %v699_v36  ;;  %v826_v56 = vmul.f32 %v762_v45, %v2747_v7 }
  0xe1   : > { %1205 = vst [vmem:[%s2043_s17 + $0x158] sm:$0xff] %v1141_v57  ;;  %v1078_v62 = vsel %vm1014_vm12, %v950_v53, %v566_v47  ;;  %1584 = vrcp.f32 %v2802_v4  ;;  %v700_v60 = vmul.f32 0.008333334, %v2795_v38  ;;  %v951_v8 = vmul.f32 %v887_v46, %v2664_v16  ;;  %v2868_v47 = vld [vmem:[%s1864_s30 + $0x1b8] sm:$0xff] }
  0xe2   : > { %v1575_v35 = vpop.eup %1574  ;;  %v1142_v9 = vadd.f32 1.0, %v1078_v62  ;;  %vm1017_vm15 = vcmp.lt.f32.partialorder %v2735_v42, 0.0625  ;;  %1586 = vpow2.f32 %v304_v55  ;;  %v889_v17 = vadd.f32 1.0, %v825_v34  ;;  %v2871_v34 = vld [vmem:[%s1864_s30 + $0x1c0] sm:$0xff] }
  0xe3   : > { %v503_v59 = vsub.f32 %v2753_v25, %v1575_v35  ;;  %v2820_v3 = vmul.f32 %v2779_v44, %v2779_v44  ;;  %1588 = vpow2.f32 %v306_v11  ;;  %v952_v19 = vmul.f32 %v888_v10, %v2682_v29 }
  0xe4   : > { %1206 = vst [vmem:[%s2043_s17 + $0x160] sm:$0xff] %v1142_v9  ;;  %vm1018_vm0 = vcmp.lt.f32.partialorder %v2747_v7, 0.0625  ;;  %v827_v16 = vmul.f32 %v763_v33, %v2761_v23  ;;  %v308_v2 = vmul.f32 1.442695, %v2813_v18  ;;  %v890_v25 = vadd.f32 1.0, %v826_v56 }
  0xe5   : > { %v1577_v63 = vpop.eup %1576  ;;  %v567_v40 = vmul.f32 0.5, %v503_v59  ;;  %v764_v15 = vadd.f32 0.16666667, %v700_v60  ;;  %v2832_v20 = vmul.f32 %v2786_v43, %v2786_v43  ;;  %v2837_v29 = vmul.f32 %v2813_v18, %v2813_v18  ;;  %v2885_v60 = vld [vmem:[%s1864_s30 + $0x1c8] sm:$0xff] }
  0xe6   : > { %v1579_v21 = vpop.eup %1578  ;;  %v504_v24 = vsub.f32 %v2767_v50, %v1577_v63  ;;  %1590 = vpow2.f32 %v308_v2  ;;  %v310_v6 = vmul.f32 1.442695, %v2823_v37  ;;  %v953_v30 = vmul.f32 %v889_v17, %v2695_v14 }
  0xe7   : > { %v2840_v61 = vpop.eup %1580  ;;  %v1079_v49 = vsel %vm1015_vm13, %v951_v8, %v567_v40  ;;  %v505_v28 = vsub.f32 %v2772_v12, %v1579_v21  ;;  %v701_v22 = vmul.f32 0.008333334, %v2820_v3  ;;  %v891_v5 = vadd.f32 1.0, %v827_v16 }
  0xe8   : > { %v1143_v50 = vadd.f32 1.0, %v1079_v49  ;;  %v568_v39 = vmul.f32 0.5, %v504_v24  ;;  %1592 = vrcp.f32 %v2840_v61  ;;  %vm1019_vm1 = vcmp.lt.f32.partialorder %v2761_v23, 0.0625 }
  0xe9   : > { %v569_v31 = vmul.f32 0.5, %v505_v28  ;;  %v828_v1 = vmul.f32 %v764_v15, %v2795_v38  ;;  %v702_v27 = vmul.f32 0.008333334, %v2832_v20  ;;  %v703_v12 = vmul.f32 0.008333334, %v2837_v29  ;;  %v2909_v15 = vld [vmem:[%s1864_s30 + $0x1d0] sm:$0xff] }
  0xea   : > { %v1583_v0 = vpop.eup %1582  ;;  %1207 = vst [vmem:[%s2043_s17 + $0x168] sm:$0xff] %v1143_v50  ;;  %v1080_v14 = vsel %vm1016_vm14, %v952_v19, %v568_v39  ;;  %1594 = vpow2.f32 %v310_v6  ;;  %v2857_v26 = vmul.f32 %v2823_v37, %v2823_v37  ;;  %v954_v58 = vmul.f32 %v890_v25, %v2718_v51  ;;  %v2916_v6 = vld [vmem:[%s1864_s30 + $0x1d8] sm:$0xff] }
  0xeb   : > { %v1585_v54 = vpop.eup %1584  ;;  %v1144_v36 = vadd.f32 1.0, %v1080_v14  ;;  %v1081_v41 = vsel %vm1017_vm15, %v953_v30, %v569_v31  ;;  %v506_v53 = vsub.f32 %v2798_v32, %v1583_v0  ;;  %v955_v55 = vmul.f32 %v891_v5, %v2724_v52 }
  0xec   : > { %v2863_v45 = vpop.eup %1586  ;;  %v1145_v48 = vadd.f32 1.0, %v1081_v41  ;;  %v507_v46 = vsub.f32 %v2802_v4, %v1585_v54  ;;  %v765_v57 = vadd.f32 0.16666667, %v701_v22  ;;  %v892_v32 = vadd.f32 1.0, %v828_v1 }
  0xed   : > { %v2873_v42 = vpop.eup %1588  ;;  %1208 = vst [vmem:[%s2043_s17 + $0x170] sm:$0xff] %v1144_v36  ;;  %v570_v11 = vmul.f32 0.5, %v506_v53  ;;  %1596 = vrcp.f32 %v2863_v45  ;;  %v766_v51 = vadd.f32 0.16666667, %v702_v27  ;;  %v767_v52 = vadd.f32 0.16666667, %v703_v12 }
  0xee   : > { %1209 = vst [vmem:[%s2043_s17 + $0x178] sm:$0xff] %v1145_v48  ;;  %v571_v10 = vmul.f32 0.5, %v507_v46  ;;  %1598 = vrcp.f32 %v2873_v42  ;;  %v704_v4 = vmul.f32 0.008333334, %v2857_v26  ;;  %v312_v62 = vmul.f32 1.442695, %v2868_v47 }
  0xef   : > { %v1082_v33 = vsel %vm1018_vm0, %v954_v58, %v570_v11  ;;  %v314_v56 = vmul.f32 1.442695, %v2871_v34  ;;  %v829_v59 = vmul.f32 %v765_v57, %v2820_v3  ;;  %v956_v7 = vmul.f32 %v892_v32, %v2751_v13  ;;  %v2939_v53 = vld [vmem:[%s1864_s30 + $0x1e0] sm:$0xff] }
  0xf0   : > { %v2887_v35 = vpop.eup %1590  ;;  %v1146_v9 = vadd.f32 1.0, %v1082_v33  ;;  %v1083_v8 = vsel %vm1019_vm1, %v955_v55, %v571_v10  ;;  %v830_v19 = vmul.f32 %v766_v51, %v2832_v20  ;;  %v831_v2 = vmul.f32 %v767_v52, %v2837_v29 }
  0xf1   : > { %v1147_v17 = vadd.f32 1.0, %v1083_v8  ;;  %1600 = vrcp.f32 %v2887_v35  ;;  %v768_v63 = vadd.f32 0.16666667, %v704_v4  ;;  %v316_v23 = vmul.f32 1.442695, %v2885_v60 }
  0xf2   : > { %v1593_v16 = vpop.eup %1592  ;;  %1210 = vst [vmem:[%s2043_s17 + $0x180] sm:$0xff] %v1146_v9  ;;  %1602 = vpow2.f32 %v312_v62  ;;  %v2902_v25 = vmul.f32 %v2868_v47, %v2868_v47  ;;  %v2906_v13 = vmul.f32 %v2871_v34, %v2871_v34  ;;  %vm1020_vm2 = vcmp.lt.f32.partialorder %v2795_v38, 0.0625 }
  0xf3   : > { %1211 = vst [vmem:[%s2043_s17 + $0x188] sm:$0xff] %v1147_v17  ;;  %v508_v40 = vsub.f32 %v2840_v61, %v1593_v16  ;;  %1604 = vpow2.f32 %v314_v56  ;;  %v893_v24 = vadd.f32 1.0, %v829_v59  ;;  %vm1021_vm3 = vcmp.lt.f32.partialorder %v2820_v3, 0.0625  ;;  %v2969_v17 = vld [vmem:[%s1864_s30 + $0x1e8] sm:$0xff] }
  0xf4   : > { %v2911_v21 = vpop.eup %1594  ;;  %1606 = vpow2.f32 %v316_v23  ;;  %v894_v49 = vadd.f32 1.0, %v830_v19  ;;  %vm1022_vm4 = vcmp.lt.f32.partialorder %v2832_v20, 0.0625  ;;  %v895_v28 = vadd.f32 1.0, %v831_v2 }
  0xf5   : > { %v572_v61 = vmul.f32 0.5, %v508_v40  ;;  %1608 = vrcp.f32 %v2911_v21  ;;  %v832_v30 = vmul.f32 %v768_v63, %v2857_v26  ;;  %v2923_v22 = vmul.f32 %v2885_v60, %v2885_v60 }
  0xf6   : > { %v318_v38 = vmul.f32 1.442695, %v2909_v15  ;;  %v705_v5 = vmul.f32 0.008333334, %v2902_v25  ;;  %v706_v31 = vmul.f32 0.008333334, %v2906_v13  ;;  %v957_v12 = vmul.f32 %v893_v24, %v2779_v44 }
  0xf7   : > { %v1597_v50 = vpop.eup %1596  ;;  %v1084_v39 = vsel %vm1020_vm2, %v956_v7, %v572_v61  ;;  %v320_v1 = vmul.f32 1.442695, %v2916_v6  ;;  %v958_v36 = vmul.f32 %v894_v49, %v2786_v43  ;;  %vm1023_vm5 = vcmp.lt.f32.partialorder %v2837_v29, 0.0625 }
  0xf8   : > { %v1599_v27 = vpop.eup %1598  ;;  %v1148_v0 = vadd.f32 1.0, %v1084_v39  ;;  %v509_v14 = vsub.f32 %v2863_v45, %v1597_v50  ;;  %1610 = vpow2.f32 %v318_v38  ;;  %v2936_v41 = vmul.f32 %v2909_v15, %v2909_v15 }
  0xf9   : > { %v510_v54 = vsub.f32 %v2873_v42, %v1599_v27  ;;  %v959_v48 = vmul.f32 %v895_v28, %v2813_v18  ;;  %v707_v45 = vmul.f32 0.008333334, %v2923_v22  ;;  %1612 = vpow2.f32 %v320_v1 }
  0xfa   : > { %1212 = vst [vmem:[%s2043_s17 + $0x190] sm:$0xff] %v1148_v0  ;;  %v573_v58 = vmul.f32 0.5, %v509_v14  ;;  %v896_v55 = vadd.f32 1.0, %v832_v30  ;;  %v769_v57 = vadd.f32 0.16666667, %v705_v5  ;;  %v2951_v51 = vmul.f32 %v2916_v6, %v2916_v6 }
  0xfb   : > { %v1601_v44 = vpop.eup %1600  ;;  %v574_v46 = vmul.f32 0.5, %v510_v54  ;;  %v770_v43 = vadd.f32 0.16666667, %v706_v31  ;;  %v322_v18 = vmul.f32 1.442695, %v2939_v53  ;;  %vm1024_vm6 = vcmp.lt.f32.partialorder %v2857_v26, 0.0625 }
  0xfc   : > { %v2944_v42 = vpop.eup %1602  ;;  %v1085_v11 = vsel %vm1021_vm3, %v957_v12, %v573_v58  ;;  %v511_v32 = vsub.f32 %v2887_v35, %v1601_v44  ;;  %v708_v3 = vmul.f32 0.008333334, %v2936_v41  ;;  %v771_v35 = vadd.f32 0.16666667, %v707_v45  ;;  %v2992_v26 = vld [vmem:[%s1864_s30 + $0x1f8] sm:$0xff] }
  0xfd   : > { %v2954_v10 = vpop.eup %1604  ;;  %v1149_v52 = vadd.f32 1.0, %v1085_v11  ;;  %v1086_v4 = vsel %vm1022_vm4, %v958_v36, %v574_v46  ;;  %1614 = vrcp.f32 %v2944_v42  ;;  %v960_v8 = vmul.f32 %v896_v55, %v2823_v37  ;;  %v2977_v37 = vld [vmem:[%s1864_s30 + $0x1f0] sm:$0xff] }
  0xfe   : > { %v2960_v33 = vpop.eup %1606  ;;  %v1150_v62 = vadd.f32 1.0, %v1086_v4  ;;  %v575_v56 = vmul.f32 0.5, %v511_v32  ;;  %1616 = vrcp.f32 %v2954_v10  ;;  %v833_v20 = vmul.f32 %v769_v57, %v2902_v25 }
  0xff   : > { %v1609_v9 = vpop.eup %1608  ;;  %1213 = vst [vmem:[%s2043_s17 + $0x198] sm:$0xff] %v1149_v52  ;;  %v834_v59 = vmul.f32 %v770_v43, %v2906_v13  ;;  %1618 = vrcp.f32 %v2960_v33  ;;  %v709_v16 = vmul.f32 0.008333334, %v2951_v51  ;;  %v772_v63 = vadd.f32 0.16666667, %v708_v3 }
 0x100   : > { %1214 = vst [vmem:[%s2043_s17 + $0x1a0] sm:$0xff] %v1150_v62  ;;  %v1087_v7 = vsel %vm1023_vm5, %v959_v48, %v575_v56  ;;  %v512_v19 = vsub.f32 %v2911_v21, %v1609_v9  ;;  %1620 = vpow2.f32 %v322_v18  ;;  %v2982_v23 = vmul.f32 %v2939_v53, %v2939_v53 }
 0x101   : > { %v1151_v2 = vadd.f32 1.0, %v1087_v7  ;;  %v835_v24 = vmul.f32 %v771_v35, %v2923_v22  ;;  %v324_v21 = vmul.f32 1.442695, %v2969_v17  ;;  %v897_v61 = vadd.f32 1.0, %v833_v20 }
 0x102   : > { %v2984_v40 = vpop.eup %1610  ;;  %v576_v29 = vmul.f32 0.5, %v512_v19  ;;  %v326_v49 = vmul.f32 1.442695, %v2977_v37  ;;  %v898_v38 = vadd.f32 1.0, %v834_v59  ;;  %v773_v50 = vadd.f32 0.16666667, %v709_v16 }
 0x103   : > { %1215 = vst [vmem:[%s2043_s17 + $0x1a8] sm:$0xff] %v1151_v2  ;;  %1622 = vrcp.f32 %v2984_v40  ;;  %v2994_v28 = vpop.eup %1612  ;;  %v836_v5 = vmul.f32 %v772_v63, %v2936_v41  ;;  %v710_v31 = vmul.f32 0.008333334, %v2982_v23  ;;  %v899_v1 = vadd.f32 1.0, %v835_v24 }
 0x104   : > { %v1088_v30 = vsel %vm1024_vm6, %v960_v8, %v576_v29  ;;  %1624 = vpow2.f32 %v324_v21  ;;  %v3001_v27 = vmul.f32 %v2969_v17, %v2969_v17  ;;  %v328_v0 = vmul.f32 1.442695, %v2992_v26 }
 0x105   : > { %v1152_v39 = vadd.f32 1.0, %v1088_v30  ;;  %1626 = vrcp.f32 %v2994_v28  ;;  %v961_v12 = vmul.f32 %v897_v61, %v2868_v47  ;;  %vm1025_vm7 = vcmp.lt.f32.partialorder %v2902_v25, 0.0625 }
 0x106   : > { %1628 = vpow2.f32 %v326_v49  ;;  %vm1026_vm8 = vcmp.lt.f32.partialorder %v2906_v13, 0.0625  ;;  %v962_v58 = vmul.f32 %v898_v38, %v2871_v34  ;;  %v837_v48 = vmul.f32 %v773_v50, %v2951_v51 }
 0x107   : > { %v1615_v14 = vpop.eup %1614  ;;  %1216 = vst [vmem:[%s2043_s17 + $0x1b0] sm:$0xff] %v1152_v39  ;;  %v3013_v45 = vmul.f32 %v2977_v37, %v2977_v37  ;;  %v900_v55 = vadd.f32 1.0, %v836_v5  ;;  %v774_v47 = vadd.f32 0.16666667, %v710_v31  ;;  %1630 = vpow2.f32 %v328_v0 }
 0x108   : > { %v1617_v54 = vpop.eup %1616  ;;  %v513_v36 = vsub.f32 %v2944_v42, %v1615_v14  ;;  %v963_v42 = vmul.f32 %v899_v1, %v2885_v60  ;;  %v711_v34 = vmul.f32 0.008333334, %v3001_v27  ;;  %vm1027_vm9 = vcmp.lt.f32.partialorder %v2923_v22, 0.0625 }
 0x109   : > { %v1619_v44 = vpop.eup %1618  ;;  %v514_v46 = vsub.f32 %v2954_v10, %v1617_v54  ;;  %v3022_v18 = vmul.f32 %v2992_v26, %v2992_v26  ;;  %v901_v4 = vadd.f32 1.0, %v837_v48  ;;  %v712_v3 = vmul.f32 0.008333334, %v3013_v45 }
 0x10a   : > { %v1621_v57 = vpop.eup %1620  ;;  %v577_v43 = vmul.f32 0.5, %v513_v36  ;;  %v515_v11 = vsub.f32 %v2960_v33, %v1619_v44  ;;  %v964_v22 = vmul.f32 %v900_v55, %v2909_v15  ;;  %v838_v56 = vmul.f32 %v774_v47, %v2982_v23 }
 0x10b   : > { %v578_v32 = vmul.f32 0.5, %v514_v46  ;;  %1632 = vrcp.f32 %v1621_v57  ;;  %v775_v20 = vadd.f32 0.16666667, %v711_v34  ;;  %vm1028_vm10 = vcmp.lt.f32.partialorder %v2936_v41, 0.0625 }
 0x10c   : > { %v1089_v10 = vsel %vm1025_vm7, %v961_v12, %v577_v43  ;;  %v579_v52 = vmul.f32 0.5, %v515_v11  ;;  %v713_v13 = vmul.f32 0.008333334, %v3022_v18  ;;  %v965_v2 = vmul.f32 %v901_v4, %v2916_v6 }
 0x10d   : > { %v1623_v33 = vpop.eup %1622  ;;  %v1153_v60 = vadd.f32 1.0, %v1089_v10  ;;  %v1090_v62 = vsel %vm1026_vm8, %v962_v58, %v578_v32  ;;  %v776_v63 = vadd.f32 0.16666667, %v712_v3  ;;  %vm1029_vm11 = vcmp.lt.f32.partialorder %v2951_v51, 0.0625 }
 0x10e   : > { %v1625_v35 = vpop.eup %1624  ;;  %v1154_v9 = vadd.f32 1.0, %v1090_v62  ;;  %v1091_v25 = vsel %vm1027_vm9, %v963_v42, %v579_v52  ;;  %v516_v8 = vsub.f32 %v2984_v40, %v1623_v33  ;;  %v902_v41 = vadd.f32 1.0, %v838_v56 }
 0x10f   : > { %v1627_v59 = vpop.eup %1626  ;;  %1217 = vst [vmem:[%s2043_s17 + $0x1b8] sm:$0xff] %v1153_v60  ;;  %v1155_v7 = vadd.f32 1.0, %v1091_v25  ;;  %1634 = vrcp.f32 %v1625_v35  ;;  %v839_v24 = vmul.f32 %v775_v20, %v3001_v27  ;;  %v777_v49 = vadd.f32 0.16666667, %v713_v13 }
 0x110   : > { %v1629_v19 = vpop.eup %1628  ;;  %1218 = vst [vmem:[%s2043_s17 + $0x1c0] sm:$0xff] %v1154_v9  ;;  %v580_v15 = vmul.f32 0.5, %v516_v8  ;;  %v517_v16 = vsub.f32 %v2994_v28, %v1627_v59  ;;  %v840_v28 = vmul.f32 %v776_v63, %v3013_v45  ;;  %v966_v51 = vmul.f32 %v902_v41, %v2939_v53 }
 0x111   : > { %1219 = vst [vmem:[%s2043_s17 + $0x1c8] sm:$0xff] %v1155_v7  ;;  %1636 = vrcp.f32 %v1629_v19  ;;  %v1631_v21 = vpop.eup %1630  ;;  %v903_v39 = vadd.f32 1.0, %v839_v24  ;;  %vm1030_vm12 = vcmp.lt.f32.partialorder %v2982_v23, 0.0625  ;;  %v841_v5 = vmul.f32 %v777_v49, %v3022_v18 }
 0x112   : > { %v1092_v40 = vsel %vm1028_vm10, %v964_v22, %v580_v15  ;;  %v581_v29 = vmul.f32 0.5, %v517_v16  ;;  %1638 = vrcp.f32 %v1631_v21  ;;  %v904_v1 = vadd.f32 1.0, %v840_v28 }
 0x113   : > { %v1156_v61 = vadd.f32 1.0, %v1092_v40  ;;  %v967_v54 = vmul.f32 %v903_v39, %v2969_v17  ;;  %vm1031_vm13 = vcmp.lt.f32.partialorder %v3001_v27, 0.0625  ;;  %v905_v53 = vadd.f32 1.0, %v841_v5 }
 0x114   : > { %v1093_v30 = vsel %vm1029_vm11, %v965_v2, %v581_v29  ;;  %v968_v23 = vmul.f32 %v904_v1, %v2977_v37  ;;  %vm1032_vm14 = vcmp.lt.f32.partialorder %v3013_v45, 0.0625  ;;  %vm1033_vm15 = vcmp.lt.f32.partialorder %v3022_v18, 0.0625 }
 0x115   : > { %v1633_v6 = vpop.eup %1632  ;;  %1220 = vst [vmem:[%s2043_s17 + $0x1d0] sm:$0xff] %v1156_v61  ;;  %v1157_v38 = vadd.f32 1.0, %v1093_v30  ;;  %v969_v27 = vmul.f32 %v905_v53, %v2992_v26 }
 0x116   : > { %v518_v50 = vsub.f32 %v1621_v57, %v1633_v6 }
 0x117   : > { %1221 = vst [vmem:[%s2043_s17 + $0x1d8] sm:$0xff] %v1157_v38 }
 0x118   : > { %v582_v31 = vmul.f32 0.5, %v518_v50 }
 0x119   : > { %v1635_v0 = vpop.eup %1634 }
 0x11a   : > { %v1094_v14 = vsel %vm1030_vm12, %v966_v51, %v582_v31  ;;  %v519_v12 = vsub.f32 %v1625_v35, %v1635_v0 }
 0x11b   : > { %v1637_v36 = vpop.eup %1636  ;;  %v1158_v58 = vadd.f32 1.0, %v1094_v14 }
 0x11c   : > { %v583_v48 = vmul.f32 0.5, %v519_v12  ;;  %v520_v44 = vsub.f32 %v1629_v19, %v1637_v36  ;;  %v1639_v46 = vpop.eup %1638 }
 0x11d   : > { %1222 = vst [vmem:[%s2043_s17 + $0x1e0] sm:$0xff] %v1158_v58  ;;  %v521_v57 = vsub.f32 %v1631_v21, %v1639_v46 }
 0x11e   : > { %v1095_v55 = vsel %vm1031_vm13, %v967_v54, %v583_v48  ;;  %v584_v47 = vmul.f32 0.5, %v520_v44 }
 0x11f   : > { %v1159_v17 = vadd.f32 1.0, %v1095_v55  ;;  %v585_v11 = vmul.f32 0.5, %v521_v57 }
 0x120   : > { %v1096_v43 = vsel %vm1032_vm14, %v968_v23, %v584_v47 }
 0x121   : > { %1223 = vst [vmem:[%s2043_s17 + $0x1e8] sm:$0xff] %v1159_v17  ;;  %v1160_v37 = vadd.f32 1.0, %v1096_v43  ;;  %v1097_v45 = vsel %vm1033_vm15, %v969_v27, %v585_v11 }
 0x122   : > { %v1161_v42 = vadd.f32 1.0, %v1097_v45 }
 0x123   : > { %1224 = vst [vmem:[%s2043_s17 + $0x1f0] sm:$0xff] %v1160_v37 }
 0x124   : > { %1225 = vst [vmem:[%s2043_s17 + $0x1f8] sm:$0xff] %v1161_v42 }
 0x125   : > { %1683 = shalt.err (!%p1680_p2)
}
 0x126   : > { %s1684_s13 = scalar_lea.hbm %s3061_s2, 8192  ;;  %s1688_s20 = scalar_lea.hbm %s3109_s1, 16384 }
 0x127   : > { %p1685_p4 = scmp.ne.s32.totalorder %s3061_s2, %s1684_s13  ;;  %p1689_p9 = scmp.lt.u32.totalorder %s3061_s2, %s3109_s1 }
 0x128   : > { %p1690_p1 = scmp.lt.u32.totalorder %s1688_s20, %s1684_s13  ;;  %p1692_p6 = scmp.lt.u32.totalorder %s1684_s13, %s3061_s2 }
 0x129   : > { %p1686_p5 = pnand %p1685_p4, %p3116_p11 }
 0x12a   : > { %p1691_p3 = por %p1690_p1, %p1689_p9 }
 0x12b   : > { %p1687_p7 = pneg %p1686_p5 }
 0x12c   : > { %p1693_p12 = por %p1692_p6, %p1691_p3 }
 0x12e   : > { %p1694_p13 = pnand %p1693_p12, %p1687_p7 }
 0x130   : > { %1697 = shalt.err (!%p1694_p13)
}
 0x131   : > { %s1742_s24 = smov 1024   ;;  %s1743_s26 = smov 64  }
 0x132   : > { %1336 = dma.vmem_to_hbm [thread:$0]  (%p3116_p11), %s3063_s27, 8192, %s3061_s2, %s1227_s3, %s1742_s24, %s1742_s24, %s1743_s26  }
 0x133 PF: > { %s1256_s30 = sand.u32 1, %s1724_s6   ;;  %p3117_p8 = scmp.ne.s32.totalorder %s3114_s19, 0 }
 0x134   : > { %p3118_p10 = scmp.ge.s32.totalorder %s1736_s9, 2  ;;  %s1257_s17 = scalar_lea.sflag [#allocation4], %s1256_s30 }
 0x136   : > { %p1343_p0 = pnand %p3118_p10, %p3117_p8 }
 0x138   : > { %1719 = dma.done.wait (!%p1343_p0), %s1257_s17, 8192  }
 0x139   : > { %1721 = vsyncadd (!%p1343_p0), %s1257_s17, 4294959104  ;;  %p14_p2 = scmp.ge.s32.totalorder %s1779_s12, 4   ;;  %s3119_s6 = smov %s1728_s7 }
 0x13a   : > { %s3120_s7 = smov %s1732_s8  ;;  %s3121_s8 = smov %s1791_s15 }
 0x13b   : > { %s3122_s9 = smov %s1779_s12  ;;  %16 = sbr.rel (!%p14_p2) target bundleno = 5 (0x5), region = 69 }
 0x142   :  { %1262 = vsyncpa [#allocation3], 1 }
 0x143   :  { %1264 = vsyncpa [#allocation3 + $0x1], 1 }
 0x144   :  { %1265 = vsyncpa [#allocation4], 1 }
 0x145   :  { %1267 = vsyncpa [#allocation4 + $0x1], 1 }

</bundles_post_ra>
